<compile_context>
chip_gen: v5e
topology: v5e:2x2
jax: 0.10.0
libtpu: 0.0.40
codegen_flags: <defaults>
</compile_context>

<pallas_src>
import functools

import numpy as np
import jax
import jax.numpy as jnp
from jax.experimental import pallas as pl
from jax.experimental.pallas import tpu as pltpu


def _round_up(x, m):
    return (x + m - 1) // m * m


# ---------------------------------------------------------------------------
# Fused Pallas kernel: both branches' [stacked LSTM layers -> Linear] in one
# kernel body.  Refs: x, (w_ih, w_hh, bias) * num_layers, fc_w, fc_b, out,
# scratch (hoisted projection, inter-layer sequence).
# ---------------------------------------------------------------------------
def _fused_lstm_fc_kernel(num_layers, b_pad, x_ref, *refs):
    layer_refs = [refs[3 * l: 3 * l + 3] for l in range(num_layers)]
    fcw_ref, fcb_ref, out_ref, xp_sc, seq_sc = refs[3 * num_layers:]

    tb = x_ref.shape[0]            # T * b_pad (time-major, flattened rows)
    t_steps = tb // b_pad
    hb = seq_sc.shape[1]           # combined hidden width = 2 * H (both branches)

    h = None
    for li, (wih_ref, whh_ref, b_ref) in enumerate(layer_refs):
        # ---- hoisted input projection for ALL timesteps: one big MXU matmul.
        # Bias is pre-summed (b_ih + b_hh) and pre-scaled (i/f/o cols * 0.5).
        seq_in = x_ref[...].astype(jnp.bfloat16) if li == 0 else seq_sc[...]
        xp_sc[...] = (
            jnp.dot(seq_in, wih_ref[...], preferred_element_type=jnp.float32)
            + b_ref[...]
        )

        whh = whh_ref[...]          # (hb, 4*hb) bf16 block-diagonal, 8 vregs
        h = jnp.zeros((b_pad, hb), jnp.float32)
        c = jnp.zeros((b_pad, hb), jnp.float32)
        last_layer = li == num_layers - 1

        # ---- serial recurrence, fully unrolled (T small & static).  Only the
        # single combined h @ W_hh matmul remains on the per-step chain.
        for t in range(t_steps):
            gates = xp_sc[t * b_pad:(t + 1) * b_pad, :] + jnp.dot(
                h.astype(jnp.bfloat16), whh,
                preferred_element_type=jnp.float32)       # (b_pad, 4*hb)
            # i/f/o weight columns are pre-scaled by 0.5, so one tanh over the
            # whole gates block gives tanh(z/2) for i/f/o and tanh(z) for g.
            act = jnp.tanh(gates)
            i_g = 0.5 * act[:, 0 * hb:1 * hb] + 0.5       # sigmoid(z_i)
            f_g = 0.5 * act[:, 1 * hb:2 * hb] + 0.5       # sigmoid(z_f)
            g_g = act[:, 2 * hb:3 * hb]                   # tanh(z_g)
            o_g = 0.5 * act[:, 3 * hb:4 * hb] + 0.5       # sigmoid(z_o)
            c = f_g * c + i_g * g_g
            h = o_g * jnp.tanh(c)
            if not last_layer:      # next layer's input stays resident in VMEM
                seq_sc[t * b_pad:(t + 1) * b_pad, :] = h.astype(jnp.bfloat16)

    # ---- fused Linear heads on the last timestep of the top layer.  Both
    # branches' heads live in one (hb, 128) weight: branch-2 (returned) output
    # in lanes [0:O], branch-1 (discarded, but still computed as in the
    # PyTorch forward) in lanes [O:2O].  Lane-dense 128-wide store.
    out = jnp.dot(h.astype(jnp.bfloat16), fcw_ref[...],
                  preferred_element_type=jnp.float32) + fcb_ref[...]
    out_ref[...] = out.astype(out_ref.dtype)


# ---------------------------------------------------------------------------
# Wrapper: pads batch, goes time-major, runs one fused pallas_call
# ---------------------------------------------------------------------------
def fused_model_call(x, packed):
    """x: (B, T, D) batch-first.  Returns (B_pad, 128) padded output slab."""
    B, T, D = x.shape
    layers = packed["layers"]                 # list of (wih, whh, bias)
    num_layers = len(layers)
    HB = layers[0][1].shape[0]                # combined hidden width (2*H)
    GW = layers[0][1].shape[1]                # combined gate width (4*HB)
    OPAD = packed["fc_w"].shape[1]            # 128 (lane-dense output)
    b_pad = _round_up(B, 8)

    # pad batch to a sublane multiple, go time-major, flatten (T, Bp) -> rows
    x_p = jnp.pad(x, ((0, b_pad - B), (0, 0), (0, 0)))
    x_tm = jnp.transpose(x_p, (1, 0, 2)).reshape(T * b_pad, D)

    args = [x_tm]
    in_specs = [pl.BlockSpec((T * b_pad, D), lambda i: (0, 0))]
    for (wih, whh, b) in layers:
        args += [wih, whh, b]
        in_specs += [
            pl.BlockSpec(tuple(wih.shape), lambda i: (0, 0)),
            pl.BlockSpec(tuple(whh.shape), lambda i: (0, 0)),
            pl.BlockSpec(tuple(b.shape), lambda i: (0, 0)),
        ]
    args += [packed["fc_w"], packed["fc_b"]]
    in_specs += [
        pl.BlockSpec(tuple(packed["fc_w"].shape), lambda i: (0, 0)),
        pl.BlockSpec(tuple(packed["fc_b"].shape), lambda i: (0, 0)),
    ]

    return pl.pallas_call(
        functools.partial(_fused_lstm_fc_kernel, num_layers, b_pad),
        out_shape=jax.ShapeDtypeStruct((b_pad, OPAD), jnp.float32),
        grid_spec=pltpu.PrefetchScalarGridSpec(
            num_scalar_prefetch=0,
            grid=(1,),                        # both branches fused in one step
            in_specs=in_specs,
            out_specs=pl.BlockSpec((b_pad, OPAD), lambda i: (0, 0)),
            scratch_shapes=[
                pltpu.VMEM((T * b_pad, GW), jnp.float32),     # hoisted x-proj
                pltpu.VMEM((T * b_pad, HB), jnp.bfloat16),    # layer i -> i+1 seq
            ],
        ),
        compiler_params=pltpu.CompilerParams(
            dimension_semantics=("arbitrary",),
        ),
    )(*args)


@functools.partial(jax.jit, static_argnames=("output_size",))
def model_forward(x, packed, *, output_size):
    """Mirrors LSTM.forward: branch 1 (lstm1+fc1) is computed inside the same
    kernel (block-diagonal lanes) and discarded; branch 2 (lstm2+fc2) is
    returned."""
    B = x.shape[0]
    out_pad = fused_model_call(x, packed)     # (B_pad, 128)
    return out_pad[:B, :output_size]


# ---------------------------------------------------------------------------
# Parameter construction (PyTorch layout) and packing into the fused layout
# ---------------------------------------------------------------------------
def init_params(key, input_size, hidden_size, num_layers, output_size):
    s = 1.0 / (hidden_size ** 0.5)

    def u(k, shape):
        return jax.random.uniform(k, shape, jnp.float32, -s, s)

    params = {}
    for idx in (1, 2):
        layers = []
        for l in range(num_layers):
            d_in = input_size if l == 0 else hidden_size
            key, k1, k2, k3, k4 = jax.random.split(key, 5)
            layers.append({
                "w_ih": u(k1, (4 * hidden_size, d_in)),
                "w_hh": u(k2, (4 * hidden_size, hidden_size)),
                "b_ih": u(k3, (4 * hidden_size,)),
                "b_hh": u(k4, (4 * hidden_size,)),
            })
        params[f"lstm{idx}"] = layers
        key, k1, k2 = jax.random.split(key, 3)
        params[f"fc{idx}_w"] = u(k1, (output_size, hidden_size))
        params[f"fc{idx}_b"] = u(k2, (output_size,))
    return params


def pack_params(params, hidden_size, output_size):
    """Fuse both branches on the lane axis:
      * combined hidden width HB = 2*H, combined gate width GW = 4*HB with
        column layout [i0 i1 | f0 f1 | g0 g1 | o0 o1] (each block H wide);
      * layer-0 W_ih is row-shared (same x for both branches), layer>=1 W_ih
        and all W_hh are block-diagonal (branch b hidden rows -> branch b gate
        columns);
      * i/f/o columns and biases pre-scaled by 0.5 so sigmoid = 0.5*tanh+0.5
        in-kernel (exact, power-of-two scale -> no bf16 precision loss);
      * FC heads packed into one (HB, 128) lane-dense weight.
    """
    H = hidden_size
    HB = 2 * H
    GW = 4 * HB
    names = ("lstm1", "lstm2")
    gate_scale = (0.5, 0.5, 1.0, 0.5)          # i, f, g, o (PyTorch order)

    def combine_shared_rows(w_ts):             # layer 0 W_ih (shared x rows)
        in_dim = w_ts[0].shape[0]
        out = np.zeros((in_dim, GW), np.float32)
        for br, wt in enumerate(w_ts):
            for k in range(4):
                out[:, k * HB + br * H:k * HB + (br + 1) * H] = (
                    gate_scale[k] * wt[:, k * H:(k + 1) * H])
        return out

    def combine_blockdiag(w_ts):               # W_hh / layer>=1 W_ih
        out = np.zeros((HB, GW), np.float32)
        for br, wt in enumerate(w_ts):
            for k in range(4):
                out[br * H:(br + 1) * H,
                    k * HB + br * H:k * HB + (br + 1) * H] = (
                        gate_scale[k] * wt[:, k * H:(k + 1) * H])
        return out

    def combine_bias(b_s):
        out = np.zeros((1, GW), np.float32)
        for br, b in enumerate(b_s):
            for k in range(4):
                out[0, k * HB + br * H:k * HB + (br + 1) * H] = (
                    gate_scale[k] * b[k * H:(k + 1) * H])
        return out

    num_layers = len(params["lstm1"])
    layers = []
    for l in range(num_layers):
        wih_ts = [np.asarray(params[n][l]["w_ih"]).T for n in names]
        whh_ts = [np.asarray(params[n][l]["w_hh"]).T for n in names]
        bias_s = [np.asarray(params[n][l]["b_ih"]) + np.asarray(params[n][l]["b_hh"])
                  for n in names]
        wih = combine_shared_rows(wih_ts) if l == 0 else combine_blockdiag(wih_ts)
        whh = combine_blockdiag(whh_ts)
        bias = combine_bias(bias_s)
        layers.append((jnp.asarray(wih, jnp.bfloat16),
                       jnp.asarray(whh, jnp.bfloat16),
                       jnp.asarray(bias, jnp.float32)))

    O = output_size
    OPAD = 128                                 # lane-dense output slab
    fc_w = np.zeros((HB, OPAD), np.float32)
    fc_b = np.zeros((1, OPAD), np.float32)
    # branch 2 (returned) -> lanes [0:O]; branch 1 (discarded) -> lanes [O:2O]
    fc_w[H:2 * H, 0:O] = np.asarray(params["fc2_w"]).T
    fc_b[0, 0:O] = np.asarray(params["fc2_b"])
    fc_w[0:H, O:2 * O] = np.asarray(params["fc1_w"]).T
    fc_b[0, O:2 * O] = np.asarray(params["fc1_b"])

    return {"layers": layers,
            "fc_w": jnp.asarray(fc_w, jnp.bfloat16),
            "fc_b": jnp.asarray(fc_b, jnp.float32)}


# ---------------------------------------------------------------------------
# Pure-JAX reference (f32) for a correctness check
# ---------------------------------------------------------------------------
@jax.jit
def reference_forward(x, params):
    def run_branch(layers, fc_w, fc_b):
        seq = x
        for layer in layers:
            H = layer["w_hh"].shape[1]
            B, T, _ = seq.shape
            h = jnp.zeros((B, H), jnp.float32)
            c = jnp.zeros((B, H), jnp.float32)
            outs = []
            for t in range(T):
                g = (seq[:, t] @ layer["w_ih"].T + layer["b_ih"]
                     + h @ layer["w_hh"].T + layer["b_hh"])
                i = jax.nn.sigmoid(g[:, 0:H])
                f = jax.nn.sigmoid(g[:, H:2 * H])
                gg = jnp.tanh(g[:, 2 * H:3 * H])
                o = jax.nn.sigmoid(g[:, 3 * H:4 * H])
                c = f * c + i * gg
                h = o * jnp.tanh(c)
                outs.append(h)
            seq = jnp.stack(outs, axis=1)
        return seq[:, -1] @ fc_w.T + fc_b

    _ = run_branch(params["lstm1"], params["fc1_w"], params["fc1_b"])  # discarded
    return run_branch(params["lstm2"], params["fc2_w"], params["fc2_b"])


if __name__ == "__main__":
    batch, seq_len = 2, 8
    input_size, hidden_size, num_layers, output_size = 16, 32, 2, 4

    root = jax.random.PRNGKey(0)
    k_x, k_p = jax.random.split(root)
    x = jax.random.normal(k_x, (batch, seq_len, input_size), jnp.float32)
    params = init_params(k_p, input_size, hidden_size, num_layers, output_size)
    packed = pack_params(params, hidden_size, output_size)

    out = model_forward(x, packed, output_size=output_size)
    out = jax.block_until_ready(out)
    assert out.shape == (batch, output_size), out.shape

    ref = jax.block_until_ready(reference_forward(x, params))
    np.testing.assert_allclose(np.asarray(out), np.asarray(ref),
                               atol=5e-2, rtol=5e-2)
    print("KERNEL_OK")
</pallas_src>

<mosaic_0001>
module attributes {stable_mosaic.version = 11 : i64} {
  func.func @_fused_lstm_fc_kernel(%arg0: i32, %arg1: memref<64x16xf32, #tpu.memory_space<vmem>>, %arg2: memref<16x256xbf16, #tpu.memory_space<vmem>>, %arg3: memref<64x256xbf16, #tpu.memory_space<vmem>>, %arg4: memref<1x256xf32, #tpu.memory_space<vmem>>, %arg5: memref<64x256xbf16, #tpu.memory_space<vmem>>, %arg6: memref<64x256xbf16, #tpu.memory_space<vmem>>, %arg7: memref<1x256xf32, #tpu.memory_space<vmem>>, %arg8: memref<64x128xbf16, #tpu.memory_space<vmem>>, %arg9: memref<1x128xf32, #tpu.memory_space<vmem>>, %arg10: memref<8x128xf32, #tpu.memory_space<vmem>>, %arg11: memref<64x256xf32, #tpu.memory_space<vmem>>, %arg12: memref<64x64xbf16, #tpu.memory_space<vmem>>) attributes {dimension_semantics = [#tpu.dimension_semantics<arbitrary>], iteration_bounds = array<i64: 1>, scalar_prefetch = 0 : i64, scratch_operands = 2 : i64, tpu.core_type = #tpu.core_type<tc>, window_params = [{pipeline_mode = #tpu.pipeline_mode<synchronous>, transform_indices = @transform_0, window_bounds = array<i64: 64, 16>}, {pipeline_mode = #tpu.pipeline_mode<synchronous>, transform_indices = @transform_1, window_bounds = array<i64: 16, 256>}, {pipeline_mode = #tpu.pipeline_mode<synchronous>, transform_indices = @transform_2, window_bounds = array<i64: 64, 256>}, {pipeline_mode = #tpu.pipeline_mode<synchronous>, transform_indices = @transform_3, window_bounds = array<i64: 1, 256>}, {pipeline_mode = #tpu.pipeline_mode<synchronous>, transform_indices = @transform_4, window_bounds = array<i64: 64, 256>}, {pipeline_mode = #tpu.pipeline_mode<synchronous>, transform_indices = @transform_5, window_bounds = array<i64: 64, 256>}, {pipeline_mode = #tpu.pipeline_mode<synchronous>, transform_indices = @transform_6, window_bounds = array<i64: 1, 256>}, {pipeline_mode = #tpu.pipeline_mode<synchronous>, transform_indices = @transform_7, window_bounds = array<i64: 64, 128>}, {pipeline_mode = #tpu.pipeline_mode<synchronous>, transform_indices = @transform_8, window_bounds = array<i64: 1, 128>}, {pipeline_mode = #tpu.pipeline_mode<synchronous>, transform_indices = @transform_9, window_bounds = array<i64: 8, 128>}]} {
    %c0 = arith.constant 0 : index
    %c0_0 = arith.constant 0 : index
    %0 = vector.load %arg1[%c0, %c0_0] : memref<64x16xf32, #tpu.memory_space<vmem>>, vector<64x16xf32>
    %1 = arith.truncf %0 : vector<64x16xf32> to vector<64x16xbf16>
    %c0_1 = arith.constant 0 : index
    %c0_2 = arith.constant 0 : index
    %2 = vector.load %arg2[%c0_1, %c0_2] : memref<16x256xbf16, #tpu.memory_space<vmem>>, vector<16x256xbf16>
    %cst = arith.constant dense<0.000000e+00> : vector<64x256xf32>
    %3 = tpu.matmul %1, %2, %cst {dimension_numbers = #tpu.dot_dimension_numbers<[1], [0], [0], [1], [0, 0, 1, 1], [], []>} : vector<64x16xbf16>, vector<16x256xbf16>, vector<64x256xf32> -> vector<64x256xf32>
    %c0_3 = arith.constant 0 : index
    %c0_4 = arith.constant 0 : index
    %4 = vector.load %arg4[%c0_3, %c0_4] : memref<1x256xf32, #tpu.memory_space<vmem>>, vector<1x256xf32>
    %5 = vector.broadcast %4 : vector<1x256xf32> to vector<64x256xf32>
    %6 = arith.addf %3, %5 : vector<64x256xf32>
    %c0_5 = arith.constant 0 : index
    %c0_6 = arith.constant 0 : index
    %7 = vector.load %arg11[%c0_5, %c0_6] : memref<64x256xf32, #tpu.memory_space<vmem>>, vector<64x256xf32>
    tpu.vector_store %arg11[%c0_5, %c0_6], %6 {strides = array<i32>} : memref<64x256xf32, #tpu.memory_space<vmem>>, vector<64x256xf32>,
    %c0_7 = arith.constant 0 : index
    %c0_8 = arith.constant 0 : index
    %8 = vector.load %arg3[%c0_7, %c0_8] : memref<64x256xbf16, #tpu.memory_space<vmem>>, vector<64x256xbf16>
    %cst_9 = arith.constant 0.000000e+00 : f32
    %9 = vector.broadcast %cst_9 : f32 to vector<8x64xf32>
    %cst_10 = arith.constant 0.000000e+00 : f32
    %10 = vector.broadcast %cst_10 : f32 to vector<8x64xf32>
    %c0_11 = arith.constant 0 : index
    %c0_12 = arith.constant 0 : index
    %11 = vector.load %arg11[%c0_11, %c0_12] : memref<64x256xf32, #tpu.memory_space<vmem>>, vector<8x256xf32>
    %12 = arith.truncf %9 : vector<8x64xf32> to vector<8x64xbf16>
    %cst_13 = arith.constant dense<0.000000e+00> : vector<8x256xf32>
    %13 = tpu.matmul %12, %8, %cst_13 {dimension_numbers = #tpu.dot_dimension_numbers<[1], [0], [0], [1], [0, 0, 1, 1], [], []>} : vector<8x64xbf16>, vector<64x256xbf16>, vector<8x256xf32> -> vector<8x256xf32>
    %14 = arith.addf %11, %13 : vector<8x256xf32>
    %15 = math.tanh %14 : vector<8x256xf32>
    %16 = vector.extract_strided_slice %15 {offsets = [0, 0], sizes = [8, 64], strides = [1, 1]} : vector<8x256xf32> to vector<8x64xf32>
    %cst_14 = arith.constant 5.000000e-01 : f32
    %17 = vector.broadcast %cst_14 : f32 to vector<8x64xf32>
    %18 = arith.mulf %17, %16 : vector<8x64xf32>
    %cst_15 = arith.constant 5.000000e-01 : f32
    %19 = vector.broadcast %cst_15 : f32 to vector<8x64xf32>
    %20 = arith.addf %18, %19 : vector<8x64xf32>
    %21 = vector.extract_strided_slice %15 {offsets = [0, 64], sizes = [8, 64], strides = [1, 1]} : vector<8x256xf32> to vector<8x64xf32>
    %cst_16 = arith.constant 5.000000e-01 : f32
    %22 = vector.broadcast %cst_16 : f32 to vector<8x64xf32>
    %23 = arith.mulf %22, %21 : vector<8x64xf32>
    %cst_17 = arith.constant 5.000000e-01 : f32
    %24 = vector.broadcast %cst_17 : f32 to vector<8x64xf32>
    %25 = arith.addf %23, %24 : vector<8x64xf32>
    %26 = vector.extract_strided_slice %15 {offsets = [0, 128], sizes = [8, 64], strides = [1, 1]} : vector<8x256xf32> to vector<8x64xf32>
    %27 = vector.extract_strided_slice %15 {offsets = [0, 192], sizes = [8, 64], strides = [1, 1]} : vector<8x256xf32> to vector<8x64xf32>
    %cst_18 = arith.constant 5.000000e-01 : f32
    %28 = vector.broadcast %cst_18 : f32 to vector<8x64xf32>
    %29 = arith.mulf %28, %27 : vector<8x64xf32>
    %cst_19 = arith.constant 5.000000e-01 : f32
    %30 = vector.broadcast %cst_19 : f32 to vector<8x64xf32>
    %31 = arith.addf %29, %30 : vector<8x64xf32>
    %32 = arith.mulf %25, %10 : vector<8x64xf32>
    %33 = arith.mulf %20, %26 : vector<8x64xf32>
    %34 = arith.addf %32, %33 : vector<8x64xf32>
    %35 = math.tanh %34 : vector<8x64xf32>
    %36 = arith.mulf %31, %35 : vector<8x64xf32>
    %37 = arith.truncf %36 : vector<8x64xf32> to vector<8x64xbf16>
    %c0_20 = arith.constant 0 : index
    %c0_21 = arith.constant 0 : index
    %38 = vector.load %arg12[%c0_20, %c0_21] : memref<64x64xbf16, #tpu.memory_space<vmem>>, vector<8x64xbf16>
    tpu.vector_store %arg12[%c0_20, %c0_21], %37 {strides = array<i32>} : memref<64x64xbf16, #tpu.memory_space<vmem>>, vector<8x64xbf16>,
    %c8 = arith.constant 8 : index
    %c0_22 = arith.constant 0 : index
    %39 = vector.load %arg11[%c8, %c0_22] : memref<64x256xf32, #tpu.memory_space<vmem>>, vector<8x256xf32>
    %40 = arith.truncf %36 : vector<8x64xf32> to vector<8x64xbf16>
    %cst_23 = arith.constant dense<0.000000e+00> : vector<8x256xf32>
    %41 = tpu.matmul %40, %8, %cst_23 {dimension_numbers = #tpu.dot_dimension_numbers<[1], [0], [0], [1], [0, 0, 1, 1], [], []>} : vector<8x64xbf16>, vector<64x256xbf16>, vector<8x256xf32> -> vector<8x256xf32>
    %42 = arith.addf %39, %41 : vector<8x256xf32>
    %43 = math.tanh %42 : vector<8x256xf32>
    %44 = vector.extract_strided_slice %43 {offsets = [0, 0], sizes = [8, 64], strides = [1, 1]} : vector<8x256xf32> to vector<8x64xf32>
    %cst_24 = arith.constant 5.000000e-01 : f32
    %45 = vector.broadcast %cst_24 : f32 to vector<8x64xf32>
    %46 = arith.mulf %45, %44 : vector<8x64xf32>
    %cst_25 = arith.constant 5.000000e-01 : f32
    %47 = vector.broadcast %cst_25 : f32 to vector<8x64xf32>
    %48 = arith.addf %46, %47 : vector<8x64xf32>
    %49 = vector.extract_strided_slice %43 {offsets = [0, 64], sizes = [8, 64], strides = [1, 1]} : vector<8x256xf32> to vector<8x64xf32>
    %cst_26 = arith.constant 5.000000e-01 : f32
    %50 = vector.broadcast %cst_26 : f32 to vector<8x64xf32>
    %51 = arith.mulf %50, %49 : vector<8x64xf32>
    %cst_27 = arith.constant 5.000000e-01 : f32
    %52 = vector.broadcast %cst_27 : f32 to vector<8x64xf32>
    %53 = arith.addf %51, %52 : vector<8x64xf32>
    %54 = vector.extract_strided_slice %43 {offsets = [0, 128], sizes = [8, 64], strides = [1, 1]} : vector<8x256xf32> to vector<8x64xf32>
    %55 = vector.extract_strided_slice %43 {offsets = [0, 192], sizes = [8, 64], strides = [1, 1]} : vector<8x256xf32> to vector<8x64xf32>
    %cst_28 = arith.constant 5.000000e-01 : f32
    %56 = vector.broadcast %cst_28 : f32 to vector<8x64xf32>
    %57 = arith.mulf %56, %55 : vector<8x64xf32>
    %cst_29 = arith.constant 5.000000e-01 : f32
    %58 = vector.broadcast %cst_29 : f32 to vector<8x64xf32>
    %59 = arith.addf %57, %58 : vector<8x64xf32>
    %60 = arith.mulf %53, %34 : vector<8x64xf32>
    %61 = arith.mulf %48, %54 : vector<8x64xf32>
    %62 = arith.addf %60, %61 : vector<8x64xf32>
    %63 = math.tanh %62 : vector<8x64xf32>
    %64 = arith.mulf %59, %63 : vector<8x64xf32>
    %65 = arith.truncf %64 : vector<8x64xf32> to vector<8x64xbf16>
    %c8_30 = arith.constant 8 : index
    %c0_31 = arith.constant 0 : index
    %66 = vector.load %arg12[%c8_30, %c0_31] : memref<64x64xbf16, #tpu.memory_space<vmem>>, vector<8x64xbf16>
    tpu.vector_store %arg12[%c8_30, %c0_31], %65 {strides = array<i32>} : memref<64x64xbf16, #tpu.memory_space<vmem>>, vector<8x64xbf16>,
    %c16 = arith.constant 16 : index
    %c0_32 = arith.constant 0 : index
    %67 = vector.load %arg11[%c16, %c0_32] : memref<64x256xf32, #tpu.memory_space<vmem>>, vector<8x256xf32>
    %68 = arith.truncf %64 : vector<8x64xf32> to vector<8x64xbf16>
    %cst_33 = arith.constant dense<0.000000e+00> : vector<8x256xf32>
    %69 = tpu.matmul %68, %8, %cst_33 {dimension_numbers = #tpu.dot_dimension_numbers<[1], [0], [0], [1], [0, 0, 1, 1], [], []>} : vector<8x64xbf16>, vector<64x256xbf16>, vector<8x256xf32> -> vector<8x256xf32>
    %70 = arith.addf %67, %69 : vector<8x256xf32>
    %71 = math.tanh %70 : vector<8x256xf32>
    %72 = vector.extract_strided_slice %71 {offsets = [0, 0], sizes = [8, 64], strides = [1, 1]} : vector<8x256xf32> to vector<8x64xf32>
    %cst_34 = arith.constant 5.000000e-01 : f32
    %73 = vector.broadcast %cst_34 : f32 to vector<8x64xf32>
    %74 = arith.mulf %73, %72 : vector<8x64xf32>
    %cst_35 = arith.constant 5.000000e-01 : f32
    %75 = vector.broadcast %cst_35 : f32 to vector<8x64xf32>
    %76 = arith.addf %74, %75 : vector<8x64xf32>
    %77 = vector.extract_strided_slice %71 {offsets = [0, 64], sizes = [8, 64], strides = [1, 1]} : vector<8x256xf32> to vector<8x64xf32>
    %cst_36 = arith.constant 5.000000e-01 : f32
    %78 = vector.broadcast %cst_36 : f32 to vector<8x64xf32>
    %79 = arith.mulf %78, %77 : vector<8x64xf32>
    %cst_37 = arith.constant 5.000000e-01 : f32
    %80 = vector.broadcast %cst_37 : f32 to vector<8x64xf32>
    %81 = arith.addf %79, %80 : vector<8x64xf32>
    %82 = vector.extract_strided_slice %71 {offsets = [0, 128], sizes = [8, 64], strides = [1, 1]} : vector<8x256xf32> to vector<8x64xf32>
    %83 = vector.extract_strided_slice %71 {offsets = [0, 192], sizes = [8, 64], strides = [1, 1]} : vector<8x256xf32> to vector<8x64xf32>
    %cst_38 = arith.constant 5.000000e-01 : f32
    %84 = vector.broadcast %cst_38 : f32 to vector<8x64xf32>
    %85 = arith.mulf %84, %83 : vector<8x64xf32>
    %cst_39 = arith.constant 5.000000e-01 : f32
    %86 = vector.broadcast %cst_39 : f32 to vector<8x64xf32>
    %87 = arith.addf %85, %86 : vector<8x64xf32>
    %88 = arith.mulf %81, %62 : vector<8x64xf32>
    %89 = arith.mulf %76, %82 : vector<8x64xf32>
    %90 = arith.addf %88, %89 : vector<8x64xf32>
    %91 = math.tanh %90 : vector<8x64xf32>
    %92 = arith.mulf %87, %91 : vector<8x64xf32>
    %93 = arith.truncf %92 : vector<8x64xf32> to vector<8x64xbf16>
    %c16_40 = arith.constant 16 : index
    %c0_41 = arith.constant 0 : index
    %94 = vector.load %arg12[%c16_40, %c0_41] : memref<64x64xbf16, #tpu.memory_space<vmem>>, vector<8x64xbf16>
    tpu.vector_store %arg12[%c16_40, %c0_41], %93 {strides = array<i32>} : memref<64x64xbf16, #tpu.memory_space<vmem>>, vector<8x64xbf16>,
    %c24 = arith.constant 24 : index
    %c0_42 = arith.constant 0 : index
    %95 = vector.load %arg11[%c24, %c0_42] : memref<64x256xf32, #tpu.memory_space<vmem>>, vector<8x256xf32>
    %96 = arith.truncf %92 : vector<8x64xf32> to vector<8x64xbf16>
    %cst_43 = arith.constant dense<0.000000e+00> : vector<8x256xf32>
    %97 = tpu.matmul %96, %8, %cst_43 {dimension_numbers = #tpu.dot_dimension_numbers<[1], [0], [0], [1], [0, 0, 1, 1], [], []>} : vector<8x64xbf16>, vector<64x256xbf16>, vector<8x256xf32> -> vector<8x256xf32>
    %98 = arith.addf %95, %97 : vector<8x256xf32>
    %99 = math.tanh %98 : vector<8x256xf32>
    %100 = vector.extract_strided_slice %99 {offsets = [0, 0], sizes = [8, 64], strides = [1, 1]} : vector<8x256xf32> to vector<8x64xf32>
    %cst_44 = arith.constant 5.000000e-01 : f32
    %101 = vector.broadcast %cst_44 : f32 to vector<8x64xf32>
    %102 = arith.mulf %101, %100 : vector<8x64xf32>
    %cst_45 = arith.constant 5.000000e-01 : f32
    %103 = vector.broadcast %cst_45 : f32 to vector<8x64xf32>
    %104 = arith.addf %102, %103 : vector<8x64xf32>
    %105 = vector.extract_strided_slice %99 {offsets = [0, 64], sizes = [8, 64], strides = [1, 1]} : vector<8x256xf32> to vector<8x64xf32>
    %cst_46 = arith.constant 5.000000e-01 : f32
    %106 = vector.broadcast %cst_46 : f32 to vector<8x64xf32>
    %107 = arith.mulf %106, %105 : vector<8x64xf32>
    %cst_47 = arith.constant 5.000000e-01 : f32
    %108 = vector.broadcast %cst_47 : f32 to vector<8x64xf32>
    %109 = arith.addf %107, %108 : vector<8x64xf32>
    %110 = vector.extract_strided_slice %99 {offsets = [0, 128], sizes = [8, 64], strides = [1, 1]} : vector<8x256xf32> to vector<8x64xf32>
    %111 = vector.extract_strided_slice %99 {offsets = [0, 192], sizes = [8, 64], strides = [1, 1]} : vector<8x256xf32> to vector<8x64xf32>
    %cst_48 = arith.constant 5.000000e-01 : f32
    %112 = vector.broadcast %cst_48 : f32 to vector<8x64xf32>
    %113 = arith.mulf %112, %111 : vector<8x64xf32>
    %cst_49 = arith.constant 5.000000e-01 : f32
    %114 = vector.broadcast %cst_49 : f32 to vector<8x64xf32>
    %115 = arith.addf %113, %114 : vector<8x64xf32>
    %116 = arith.mulf %109, %90 : vector<8x64xf32>
    %117 = arith.mulf %104, %110 : vector<8x64xf32>
    %118 = arith.addf %116, %117 : vector<8x64xf32>
    %119 = math.tanh %118 : vector<8x64xf32>
    %120 = arith.mulf %115, %119 : vector<8x64xf32>
    %121 = arith.truncf %120 : vector<8x64xf32> to vector<8x64xbf16>
    %c24_50 = arith.constant 24 : index
    %c0_51 = arith.constant 0 : index
    %122 = vector.load %arg12[%c24_50, %c0_51] : memref<64x64xbf16, #tpu.memory_space<vmem>>, vector<8x64xbf16>
    tpu.vector_store %arg12[%c24_50, %c0_51], %121 {strides = array<i32>} : memref<64x64xbf16, #tpu.memory_space<vmem>>, vector<8x64xbf16>,
    %c32 = arith.constant 32 : index
    %c0_52 = arith.constant 0 : index
    %123 = vector.load %arg11[%c32, %c0_52] : memref<64x256xf32, #tpu.memory_space<vmem>>, vector<8x256xf32>
    %124 = arith.truncf %120 : vector<8x64xf32> to vector<8x64xbf16>
    %cst_53 = arith.constant dense<0.000000e+00> : vector<8x256xf32>
    %125 = tpu.matmul %124, %8, %cst_53 {dimension_numbers = #tpu.dot_dimension_numbers<[1], [0], [0], [1], [0, 0, 1, 1], [], []>} : vector<8x64xbf16>, vector<64x256xbf16>, vector<8x256xf32> -> vector<8x256xf32>
    %126 = arith.addf %123, %125 : vector<8x256xf32>
    %127 = math.tanh %126 : vector<8x256xf32>
    %128 = vector.extract_strided_slice %127 {offsets = [0, 0], sizes = [8, 64], strides = [1, 1]} : vector<8x256xf32> to vector<8x64xf32>
    %cst_54 = arith.constant 5.000000e-01 : f32
    %129 = vector.broadcast %cst_54 : f32 to vector<8x64xf32>
    %130 = arith.mulf %129, %128 : vector<8x64xf32>
    %cst_55 = arith.constant 5.000000e-01 : f32
    %131 = vector.broadcast %cst_55 : f32 to vector<8x64xf32>
    %132 = arith.addf %130, %131 : vector<8x64xf32>
    %133 = vector.extract_strided_slice %127 {offsets = [0, 64], sizes = [8, 64], strides = [1, 1]} : vector<8x256xf32> to vector<8x64xf32>
    %cst_56 = arith.constant 5.000000e-01 : f32
    %134 = vector.broadcast %cst_56 : f32 to vector<8x64xf32>
    %135 = arith.mulf %134, %133 : vector<8x64xf32>
    %cst_57 = arith.constant 5.000000e-01 : f32
    %136 = vector.broadcast %cst_57 : f32 to vector<8x64xf32>
    %137 = arith.addf %135, %136 : vector<8x64xf32>
    %138 = vector.extract_strided_slice %127 {offsets = [0, 128], sizes = [8, 64], strides = [1, 1]} : vector<8x256xf32> to vector<8x64xf32>
    %139 = vector.extract_strided_slice %127 {offsets = [0, 192], sizes = [8, 64], strides = [1, 1]} : vector<8x256xf32> to vector<8x64xf32>
    %cst_58 = arith.constant 5.000000e-01 : f32
    %140 = vector.broadcast %cst_58 : f32 to vector<8x64xf32>
    %141 = arith.mulf %140, %139 : vector<8x64xf32>
    %cst_59 = arith.constant 5.000000e-01 : f32
    %142 = vector.broadcast %cst_59 : f32 to vector<8x64xf32>
    %143 = arith.addf %141, %142 : vector<8x64xf32>
    %144 = arith.mulf %137, %118 : vector<8x64xf32>
    %145 = arith.mulf %132, %138 : vector<8x64xf32>
    %146 = arith.addf %144, %145 : vector<8x64xf32>
    %147 = math.tanh %146 : vector<8x64xf32>
    %148 = arith.mulf %143, %147 : vector<8x64xf32>
    %149 = arith.truncf %148 : vector<8x64xf32> to vector<8x64xbf16>
    %c32_60 = arith.constant 32 : index
    %c0_61 = arith.constant 0 : index
    %150 = vector.load %arg12[%c32_60, %c0_61] : memref<64x64xbf16, #tpu.memory_space<vmem>>, vector<8x64xbf16>
    tpu.vector_store %arg12[%c32_60, %c0_61], %149 {strides = array<i32>} : memref<64x64xbf16, #tpu.memory_space<vmem>>, vector<8x64xbf16>,
    %c40 = arith.constant 40 : index
    %c0_62 = arith.constant 0 : index
    %151 = vector.load %arg11[%c40, %c0_62] : memref<64x256xf32, #tpu.memory_space<vmem>>, vector<8x256xf32>
    %152 = arith.truncf %148 : vector<8x64xf32> to vector<8x64xbf16>
    %cst_63 = arith.constant dense<0.000000e+00> : vector<8x256xf32>
    %153 = tpu.matmul %152, %8, %cst_63 {dimension_numbers = #tpu.dot_dimension_numbers<[1], [0], [0], [1], [0, 0, 1, 1], [], []>} : vector<8x64xbf16>, vector<64x256xbf16>, vector<8x256xf32> -> vector<8x256xf32>
    %154 = arith.addf %151, %153 : vector<8x256xf32>
    %155 = math.tanh %154 : vector<8x256xf32>
    %156 = vector.extract_strided_slice %155 {offsets = [0, 0], sizes = [8, 64], strides = [1, 1]} : vector<8x256xf32> to vector<8x64xf32>
    %cst_64 = arith.constant 5.000000e-01 : f32
    %157 = vector.broadcast %cst_64 : f32 to vector<8x64xf32>
    %158 = arith.mulf %157, %156 : vector<8x64xf32>
    %cst_65 = arith.constant 5.000000e-01 : f32
    %159 = vector.broadcast %cst_65 : f32 to vector<8x64xf32>
    %160 = arith.addf %158, %159 : vector<8x64xf32>
    %161 = vector.extract_strided_slice %155 {offsets = [0, 64], sizes = [8, 64], strides = [1, 1]} : vector<8x256xf32> to vector<8x64xf32>
    %cst_66 = arith.constant 5.000000e-01 : f32
    %162 = vector.broadcast %cst_66 : f32 to vector<8x64xf32>
    %163 = arith.mulf %162, %161 : vector<8x64xf32>
    %cst_67 = arith.constant 5.000000e-01 : f32
    %164 = vector.broadcast %cst_67 : f32 to vector<8x64xf32>
    %165 = arith.addf %163, %164 : vector<8x64xf32>
    %166 = vector.extract_strided_slice %155 {offsets = [0, 128], sizes = [8, 64], strides = [1, 1]} : vector<8x256xf32> to vector<8x64xf32>
    %167 = vector.extract_strided_slice %155 {offsets = [0, 192], sizes = [8, 64], strides = [1, 1]} : vector<8x256xf32> to vector<8x64xf32>
    %cst_68 = arith.constant 5.000000e-01 : f32
    %168 = vector.broadcast %cst_68 : f32 to vector<8x64xf32>
    %169 = arith.mulf %168, %167 : vector<8x64xf32>
    %cst_69 = arith.constant 5.000000e-01 : f32
    %170 = vector.broadcast %cst_69 : f32 to vector<8x64xf32>
    %171 = arith.addf %169, %170 : vector<8x64xf32>
    %172 = arith.mulf %165, %146 : vector<8x64xf32>
    %173 = arith.mulf %160, %166 : vector<8x64xf32>
    %174 = arith.addf %172, %173 : vector<8x64xf32>
    %175 = math.tanh %174 : vector<8x64xf32>
    %176 = arith.mulf %171, %175 : vector<8x64xf32>
    %177 = arith.truncf %176 : vector<8x64xf32> to vector<8x64xbf16>
    %c40_70 = arith.constant 40 : index
    %c0_71 = arith.constant 0 : index
    %178 = vector.load %arg12[%c40_70, %c0_71] : memref<64x64xbf16, #tpu.memory_space<vmem>>, vector<8x64xbf16>
    tpu.vector_store %arg12[%c40_70, %c0_71], %177 {strides = array<i32>} : memref<64x64xbf16, #tpu.memory_space<vmem>>, vector<8x64xbf16>,
    %c48 = arith.constant 48 : index
    %c0_72 = arith.constant 0 : index
    %179 = vector.load %arg11[%c48, %c0_72] : memref<64x256xf32, #tpu.memory_space<vmem>>, vector<8x256xf32>
    %180 = arith.truncf %176 : vector<8x64xf32> to vector<8x64xbf16>
    %cst_73 = arith.constant dense<0.000000e+00> : vector<8x256xf32>
    %181 = tpu.matmul %180, %8, %cst_73 {dimension_numbers = #tpu.dot_dimension_numbers<[1], [0], [0], [1], [0, 0, 1, 1], [], []>} : vector<8x64xbf16>, vector<64x256xbf16>, vector<8x256xf32> -> vector<8x256xf32>
    %182 = arith.addf %179, %181 : vector<8x256xf32>
    %183 = math.tanh %182 : vector<8x256xf32>
    %184 = vector.extract_strided_slice %183 {offsets = [0, 0], sizes = [8, 64], strides = [1, 1]} : vector<8x256xf32> to vector<8x64xf32>
    %cst_74 = arith.constant 5.000000e-01 : f32
    %185 = vector.broadcast %cst_74 : f32 to vector<8x64xf32>
    %186 = arith.mulf %185, %184 : vector<8x64xf32>
    %cst_75 = arith.constant 5.000000e-01 : f32
    %187 = vector.broadcast %cst_75 : f32 to vector<8x64xf32>
    %188 = arith.addf %186, %187 : vector<8x64xf32>
    %189 = vector.extract_strided_slice %183 {offsets = [0, 64], sizes = [8, 64], strides = [1, 1]} : vector<8x256xf32> to vector<8x64xf32>
    %cst_76 = arith.constant 5.000000e-01 : f32
    %190 = vector.broadcast %cst_76 : f32 to vector<8x64xf32>
    %191 = arith.mulf %190, %189 : vector<8x64xf32>
    %cst_77 = arith.constant 5.000000e-01 : f32
    %192 = vector.broadcast %cst_77 : f32 to vector<8x64xf32>
    %193 = arith.addf %191, %192 : vector<8x64xf32>
    %194 = vector.extract_strided_slice %183 {offsets = [0, 128], sizes = [8, 64], strides = [1, 1]} : vector<8x256xf32> to vector<8x64xf32>
    %195 = vector.extract_strided_slice %183 {offsets = [0, 192], sizes = [8, 64], strides = [1, 1]} : vector<8x256xf32> to vector<8x64xf32>
    %cst_78 = arith.constant 5.000000e-01 : f32
    %196 = vector.broadcast %cst_78 : f32 to vector<8x64xf32>
    %197 = arith.mulf %196, %195 : vector<8x64xf32>
    %cst_79 = arith.constant 5.000000e-01 : f32
    %198 = vector.broadcast %cst_79 : f32 to vector<8x64xf32>
    %199 = arith.addf %197, %198 : vector<8x64xf32>
    %200 = arith.mulf %193, %174 : vector<8x64xf32>
    %201 = arith.mulf %188, %194 : vector<8x64xf32>
    %202 = arith.addf %200, %201 : vector<8x64xf32>
    %203 = math.tanh %202 : vector<8x64xf32>
    %204 = arith.mulf %199, %203 : vector<8x64xf32>
    %205 = arith.truncf %204 : vector<8x64xf32> to vector<8x64xbf16>
    %c48_80 = arith.constant 48 : index
    %c0_81 = arith.constant 0 : index
    %206 = vector.load %arg12[%c48_80, %c0_81] : memref<64x64xbf16, #tpu.memory_space<vmem>>, vector<8x64xbf16>
    tpu.vector_store %arg12[%c48_80, %c0_81], %205 {strides = array<i32>} : memref<64x64xbf16, #tpu.memory_space<vmem>>, vector<8x64xbf16>,
    %c56 = arith.constant 56 : index
    %c0_82 = arith.constant 0 : index
    %207 = vector.load %arg11[%c56, %c0_82] : memref<64x256xf32, #tpu.memory_space<vmem>>, vector<8x256xf32>
    %208 = arith.truncf %204 : vector<8x64xf32> to vector<8x64xbf16>
    %cst_83 = arith.constant dense<0.000000e+00> : vector<8x256xf32>
    %209 = tpu.matmul %208, %8, %cst_83 {dimension_numbers = #tpu.dot_dimension_numbers<[1], [0], [0], [1], [0, 0, 1, 1], [], []>} : vector<8x64xbf16>, vector<64x256xbf16>, vector<8x256xf32> -> vector<8x256xf32>
    %210 = arith.addf %207, %209 : vector<8x256xf32>
    %211 = math.tanh %210 : vector<8x256xf32>
    %212 = vector.extract_strided_slice %211 {offsets = [0, 0], sizes = [8, 64], strides = [1, 1]} : vector<8x256xf32> to vector<8x64xf32>
    %cst_84 = arith.constant 5.000000e-01 : f32
    %213 = vector.broadcast %cst_84 : f32 to vector<8x64xf32>
    %214 = arith.mulf %213, %212 : vector<8x64xf32>
    %cst_85 = arith.constant 5.000000e-01 : f32
    %215 = vector.broadcast %cst_85 : f32 to vector<8x64xf32>
    %216 = arith.addf %214, %215 : vector<8x64xf32>
    %217 = vector.extract_strided_slice %211 {offsets = [0, 64], sizes = [8, 64], strides = [1, 1]} : vector<8x256xf32> to vector<8x64xf32>
    %cst_86 = arith.constant 5.000000e-01 : f32
    %218 = vector.broadcast %cst_86 : f32 to vector<8x64xf32>
    %219 = arith.mulf %218, %217 : vector<8x64xf32>
    %cst_87 = arith.constant 5.000000e-01 : f32
    %220 = vector.broadcast %cst_87 : f32 to vector<8x64xf32>
    %221 = arith.addf %219, %220 : vector<8x64xf32>
    %222 = vector.extract_strided_slice %211 {offsets = [0, 128], sizes = [8, 64], strides = [1, 1]} : vector<8x256xf32> to vector<8x64xf32>
    %223 = vector.extract_strided_slice %211 {offsets = [0, 192], sizes = [8, 64], strides = [1, 1]} : vector<8x256xf32> to vector<8x64xf32>
    %cst_88 = arith.constant 5.000000e-01 : f32
    %224 = vector.broadcast %cst_88 : f32 to vector<8x64xf32>
    %225 = arith.mulf %224, %223 : vector<8x64xf32>
    %cst_89 = arith.constant 5.000000e-01 : f32
    %226 = vector.broadcast %cst_89 : f32 to vector<8x64xf32>
    %227 = arith.addf %225, %226 : vector<8x64xf32>
    %228 = arith.mulf %221, %202 : vector<8x64xf32>
    %229 = arith.mulf %216, %222 : vector<8x64xf32>
    %230 = arith.addf %228, %229 : vector<8x64xf32>
    %231 = math.tanh %230 : vector<8x64xf32>
    %232 = arith.mulf %227, %231 : vector<8x64xf32>
    %233 = arith.truncf %232 : vector<8x64xf32> to vector<8x64xbf16>
    %c56_90 = arith.constant 56 : index
    %c0_91 = arith.constant 0 : index
    %234 = vector.load %arg12[%c56_90, %c0_91] : memref<64x64xbf16, #tpu.memory_space<vmem>>, vector<8x64xbf16>
    tpu.vector_store %arg12[%c56_90, %c0_91], %233 {strides = array<i32>} : memref<64x64xbf16, #tpu.memory_space<vmem>>, vector<8x64xbf16>,
    %c0_92 = arith.constant 0 : index
    %c0_93 = arith.constant 0 : index
    %235 = vector.load %arg12[%c0_92, %c0_93] : memref<64x64xbf16, #tpu.memory_space<vmem>>, vector<64x64xbf16>
    %c0_94 = arith.constant 0 : index
    %c0_95 = arith.constant 0 : index
    %236 = vector.load %arg5[%c0_94, %c0_95] : memref<64x256xbf16, #tpu.memory_space<vmem>>, vector<64x256xbf16>
    %cst_96 = arith.constant dense<0.000000e+00> : vector<64x256xf32>
    %237 = tpu.matmul %235, %236, %cst_96 {dimension_numbers = #tpu.dot_dimension_numbers<[1], [0], [0], [1], [0, 0, 1, 1], [], []>} : vector<64x64xbf16>, vector<64x256xbf16>, vector<64x256xf32> -> vector<64x256xf32>
    %c0_97 = arith.constant 0 : index
    %c0_98 = arith.constant 0 : index
    %238 = vector.load %arg7[%c0_97, %c0_98] : memref<1x256xf32, #tpu.memory_space<vmem>>, vector<1x256xf32>
    %239 = vector.broadcast %238 : vector<1x256xf32> to vector<64x256xf32>
    %240 = arith.addf %237, %239 : vector<64x256xf32>
    %c0_99 = arith.constant 0 : index
    %c0_100 = arith.constant 0 : index
    %241 = vector.load %arg11[%c0_99, %c0_100] : memref<64x256xf32, #tpu.memory_space<vmem>>, vector<64x256xf32>
    tpu.vector_store %arg11[%c0_99, %c0_100], %240 {strides = array<i32>} : memref<64x256xf32, #tpu.memory_space<vmem>>, vector<64x256xf32>,
    %c0_101 = arith.constant 0 : index
    %c0_102 = arith.constant 0 : index
    %242 = vector.load %arg6[%c0_101, %c0_102] : memref<64x256xbf16, #tpu.memory_space<vmem>>, vector<64x256xbf16>
    %cst_103 = arith.constant 0.000000e+00 : f32
    %243 = vector.broadcast %cst_103 : f32 to vector<8x64xf32>
    %cst_104 = arith.constant 0.000000e+00 : f32
    %244 = vector.broadcast %cst_104 : f32 to vector<8x64xf32>
    %c0_105 = arith.constant 0 : index
    %c0_106 = arith.constant 0 : index
    %245 = vector.load %arg11[%c0_105, %c0_106] : memref<64x256xf32, #tpu.memory_space<vmem>>, vector<8x256xf32>
    %246 = arith.truncf %243 : vector<8x64xf32> to vector<8x64xbf16>
    %cst_107 = arith.constant dense<0.000000e+00> : vector<8x256xf32>
    %247 = tpu.matmul %246, %242, %cst_107 {dimension_numbers = #tpu.dot_dimension_numbers<[1], [0], [0], [1], [0, 0, 1, 1], [], []>} : vector<8x64xbf16>, vector<64x256xbf16>, vector<8x256xf32> -> vector<8x256xf32>
    %248 = arith.addf %245, %247 : vector<8x256xf32>
    %249 = math.tanh %248 : vector<8x256xf32>
    %250 = vector.extract_strided_slice %249 {offsets = [0, 0], sizes = [8, 64], strides = [1, 1]} : vector<8x256xf32> to vector<8x64xf32>
    %cst_108 = arith.constant 5.000000e-01 : f32
    %251 = vector.broadcast %cst_108 : f32 to vector<8x64xf32>
    %252 = arith.mulf %251, %250 : vector<8x64xf32>
    %cst_109 = arith.constant 5.000000e-01 : f32
    %253 = vector.broadcast %cst_109 : f32 to vector<8x64xf32>
    %254 = arith.addf %252, %253 : vector<8x64xf32>
    %255 = vector.extract_strided_slice %249 {offsets = [0, 64], sizes = [8, 64], strides = [1, 1]} : vector<8x256xf32> to vector<8x64xf32>
    %cst_110 = arith.constant 5.000000e-01 : f32
    %256 = vector.broadcast %cst_110 : f32 to vector<8x64xf32>
    %257 = arith.mulf %256, %255 : vector<8x64xf32>
    %cst_111 = arith.constant 5.000000e-01 : f32
    %258 = vector.broadcast %cst_111 : f32 to vector<8x64xf32>
    %259 = arith.addf %257, %258 : vector<8x64xf32>
    %260 = vector.extract_strided_slice %249 {offsets = [0, 128], sizes = [8, 64], strides = [1, 1]} : vector<8x256xf32> to vector<8x64xf32>
    %261 = vector.extract_strided_slice %249 {offsets = [0, 192], sizes = [8, 64], strides = [1, 1]} : vector<8x256xf32> to vector<8x64xf32>
    %cst_112 = arith.constant 5.000000e-01 : f32
    %262 = vector.broadcast %cst_112 : f32 to vector<8x64xf32>
    %263 = arith.mulf %262, %261 : vector<8x64xf32>
    %cst_113 = arith.constant 5.000000e-01 : f32
    %264 = vector.broadcast %cst_113 : f32 to vector<8x64xf32>
    %265 = arith.addf %263, %264 : vector<8x64xf32>
    %266 = arith.mulf %259, %244 : vector<8x64xf32>
    %267 = arith.mulf %254, %260 : vector<8x64xf32>
    %268 = arith.addf %266, %267 : vector<8x64xf32>
    %269 = math.tanh %268 : vector<8x64xf32>
    %270 = arith.mulf %265, %269 : vector<8x64xf32>
    %c8_114 = arith.constant 8 : index
    %c0_115 = arith.constant 0 : index
    %271 = vector.load %arg11[%c8_114, %c0_115] : memref<64x256xf32, #tpu.memory_space<vmem>>, vector<8x256xf32>
    %272 = arith.truncf %270 : vector<8x64xf32> to vector<8x64xbf16>
    %cst_116 = arith.constant dense<0.000000e+00> : vector<8x256xf32>
    %273 = tpu.matmul %272, %242, %cst_116 {dimension_numbers = #tpu.dot_dimension_numbers<[1], [0], [0], [1], [0, 0, 1, 1], [], []>} : vector<8x64xbf16>, vector<64x256xbf16>, vector<8x256xf32> -> vector<8x256xf32>
    %274 = arith.addf %271, %273 : vector<8x256xf32>
    %275 = math.tanh %274 : vector<8x256xf32>
    %276 = vector.extract_strided_slice %275 {offsets = [0, 0], sizes = [8, 64], strides = [1, 1]} : vector<8x256xf32> to vector<8x64xf32>
    %cst_117 = arith.constant 5.000000e-01 : f32
    %277 = vector.broadcast %cst_117 : f32 to vector<8x64xf32>
    %278 = arith.mulf %277, %276 : vector<8x64xf32>
    %cst_118 = arith.constant 5.000000e-01 : f32
    %279 = vector.broadcast %cst_118 : f32 to vector<8x64xf32>
    %280 = arith.addf %278, %279 : vector<8x64xf32>
    %281 = vector.extract_strided_slice %275 {offsets = [0, 64], sizes = [8, 64], strides = [1, 1]} : vector<8x256xf32> to vector<8x64xf32>
    %cst_119 = arith.constant 5.000000e-01 : f32
    %282 = vector.broadcast %cst_119 : f32 to vector<8x64xf32>
    %283 = arith.mulf %282, %281 : vector<8x64xf32>
    %cst_120 = arith.constant 5.000000e-01 : f32
    %284 = vector.broadcast %cst_120 : f32 to vector<8x64xf32>
    %285 = arith.addf %283, %284 : vector<8x64xf32>
    %286 = vector.extract_strided_slice %275 {offsets = [0, 128], sizes = [8, 64], strides = [1, 1]} : vector<8x256xf32> to vector<8x64xf32>
    %287 = vector.extract_strided_slice %275 {offsets = [0, 192], sizes = [8, 64], strides = [1, 1]} : vector<8x256xf32> to vector<8x64xf32>
    %cst_121 = arith.constant 5.000000e-01 : f32
    %288 = vector.broadcast %cst_121 : f32 to vector<8x64xf32>
    %289 = arith.mulf %288, %287 : vector<8x64xf32>
    %cst_122 = arith.constant 5.000000e-01 : f32
    %290 = vector.broadcast %cst_122 : f32 to vector<8x64xf32>
    %291 = arith.addf %289, %290 : vector<8x64xf32>
    %292 = arith.mulf %285, %268 : vector<8x64xf32>
    %293 = arith.mulf %280, %286 : vector<8x64xf32>
    %294 = arith.addf %292, %293 : vector<8x64xf32>
    %295 = math.tanh %294 : vector<8x64xf32>
    %296 = arith.mulf %291, %295 : vector<8x64xf32>
    %c16_123 = arith.constant 16 : index
    %c0_124 = arith.constant 0 : index
    %297 = vector.load %arg11[%c16_123, %c0_124] : memref<64x256xf32, #tpu.memory_space<vmem>>, vector<8x256xf32>
    %298 = arith.truncf %296 : vector<8x64xf32> to vector<8x64xbf16>
    %cst_125 = arith.constant dense<0.000000e+00> : vector<8x256xf32>
    %299 = tpu.matmul %298, %242, %cst_125 {dimension_numbers = #tpu.dot_dimension_numbers<[1], [0], [0], [1], [0, 0, 1, 1], [], []>} : vector<8x64xbf16>, vector<64x256xbf16>, vector<8x256xf32> -> vector<8x256xf32>
    %300 = arith.addf %297, %299 : vector<8x256xf32>
    %301 = math.tanh %300 : vector<8x256xf32>
    %302 = vector.extract_strided_slice %301 {offsets = [0, 0], sizes = [8, 64], strides = [1, 1]} : vector<8x256xf32> to vector<8x64xf32>
    %cst_126 = arith.constant 5.000000e-01 : f32
    %303 = vector.broadcast %cst_126 : f32 to vector<8x64xf32>
    %304 = arith.mulf %303, %302 : vector<8x64xf32>
    %cst_127 = arith.constant 5.000000e-01 : f32
    %305 = vector.broadcast %cst_127 : f32 to vector<8x64xf32>
    %306 = arith.addf %304, %305 : vector<8x64xf32>
    %307 = vector.extract_strided_slice %301 {offsets = [0, 64], sizes = [8, 64], strides = [1, 1]} : vector<8x256xf32> to vector<8x64xf32>
    %cst_128 = arith.constant 5.000000e-01 : f32
    %308 = vector.broadcast %cst_128 : f32 to vector<8x64xf32>
    %309 = arith.mulf %308, %307 : vector<8x64xf32>
    %cst_129 = arith.constant 5.000000e-01 : f32
    %310 = vector.broadcast %cst_129 : f32 to vector<8x64xf32>
    %311 = arith.addf %309, %310 : vector<8x64xf32>
    %312 = vector.extract_strided_slice %301 {offsets = [0, 128], sizes = [8, 64], strides = [1, 1]} : vector<8x256xf32> to vector<8x64xf32>
    %313 = vector.extract_strided_slice %301 {offsets = [0, 192], sizes = [8, 64], strides = [1, 1]} : vector<8x256xf32> to vector<8x64xf32>
    %cst_130 = arith.constant 5.000000e-01 : f32
    %314 = vector.broadcast %cst_130 : f32 to vector<8x64xf32>
    %315 = arith.mulf %314, %313 : vector<8x64xf32>
    %cst_131 = arith.constant 5.000000e-01 : f32
    %316 = vector.broadcast %cst_131 : f32 to vector<8x64xf32>
    %317 = arith.addf %315, %316 : vector<8x64xf32>
    %318 = arith.mulf %311, %294 : vector<8x64xf32>
    %319 = arith.mulf %306, %312 : vector<8x64xf32>
    %320 = arith.addf %318, %319 : vector<8x64xf32>
    %321 = math.tanh %320 : vector<8x64xf32>
    %322 = arith.mulf %317, %321 : vector<8x64xf32>
    %c24_132 = arith.constant 24 : index
    %c0_133 = arith.constant 0 : index
    %323 = vector.load %arg11[%c24_132, %c0_133] : memref<64x256xf32, #tpu.memory_space<vmem>>, vector<8x256xf32>
    %324 = arith.truncf %322 : vector<8x64xf32> to vector<8x64xbf16>
    %cst_134 = arith.constant dense<0.000000e+00> : vector<8x256xf32>
    %325 = tpu.matmul %324, %242, %cst_134 {dimension_numbers = #tpu.dot_dimension_numbers<[1], [0], [0], [1], [0, 0, 1, 1], [], []>} : vector<8x64xbf16>, vector<64x256xbf16>, vector<8x256xf32> -> vector<8x256xf32>
    %326 = arith.addf %323, %325 : vector<8x256xf32>
    %327 = math.tanh %326 : vector<8x256xf32>
    %328 = vector.extract_strided_slice %327 {offsets = [0, 0], sizes = [8, 64], strides = [1, 1]} : vector<8x256xf32> to vector<8x64xf32>
    %cst_135 = arith.constant 5.000000e-01 : f32
    %329 = vector.broadcast %cst_135 : f32 to vector<8x64xf32>
    %330 = arith.mulf %329, %328 : vector<8x64xf32>
    %cst_136 = arith.constant 5.000000e-01 : f32
    %331 = vector.broadcast %cst_136 : f32 to vector<8x64xf32>
    %332 = arith.addf %330, %331 : vector<8x64xf32>
    %333 = vector.extract_strided_slice %327 {offsets = [0, 64], sizes = [8, 64], strides = [1, 1]} : vector<8x256xf32> to vector<8x64xf32>
    %cst_137 = arith.constant 5.000000e-01 : f32
    %334 = vector.broadcast %cst_137 : f32 to vector<8x64xf32>
    %335 = arith.mulf %334, %333 : vector<8x64xf32>
    %cst_138 = arith.constant 5.000000e-01 : f32
    %336 = vector.broadcast %cst_138 : f32 to vector<8x64xf32>
    %337 = arith.addf %335, %336 : vector<8x64xf32>
    %338 = vector.extract_strided_slice %327 {offsets = [0, 128], sizes = [8, 64], strides = [1, 1]} : vector<8x256xf32> to vector<8x64xf32>
    %339 = vector.extract_strided_slice %327 {offsets = [0, 192], sizes = [8, 64], strides = [1, 1]} : vector<8x256xf32> to vector<8x64xf32>
    %cst_139 = arith.constant 5.000000e-01 : f32
    %340 = vector.broadcast %cst_139 : f32 to vector<8x64xf32>
    %341 = arith.mulf %340, %339 : vector<8x64xf32>
    %cst_140 = arith.constant 5.000000e-01 : f32
    %342 = vector.broadcast %cst_140 : f32 to vector<8x64xf32>
    %343 = arith.addf %341, %342 : vector<8x64xf32>
    %344 = arith.mulf %337, %320 : vector<8x64xf32>
    %345 = arith.mulf %332, %338 : vector<8x64xf32>
    %346 = arith.addf %344, %345 : vector<8x64xf32>
    %347 = math.tanh %346 : vector<8x64xf32>
    %348 = arith.mulf %343, %347 : vector<8x64xf32>
    %c32_141 = arith.constant 32 : index
    %c0_142 = arith.constant 0 : index
    %349 = vector.load %arg11[%c32_141, %c0_142] : memref<64x256xf32, #tpu.memory_space<vmem>>, vector<8x256xf32>
    %350 = arith.truncf %348 : vector<8x64xf32> to vector<8x64xbf16>
    %cst_143 = arith.constant dense<0.000000e+00> : vector<8x256xf32>
    %351 = tpu.matmul %350, %242, %cst_143 {dimension_numbers = #tpu.dot_dimension_numbers<[1], [0], [0], [1], [0, 0, 1, 1], [], []>} : vector<8x64xbf16>, vector<64x256xbf16>, vector<8x256xf32> -> vector<8x256xf32>
    %352 = arith.addf %349, %351 : vector<8x256xf32>
    %353 = math.tanh %352 : vector<8x256xf32>
    %354 = vector.extract_strided_slice %353 {offsets = [0, 0], sizes = [8, 64], strides = [1, 1]} : vector<8x256xf32> to vector<8x64xf32>
    %cst_144 = arith.constant 5.000000e-01 : f32
    %355 = vector.broadcast %cst_144 : f32 to vector<8x64xf32>
    %356 = arith.mulf %355, %354 : vector<8x64xf32>
    %cst_145 = arith.constant 5.000000e-01 : f32
    %357 = vector.broadcast %cst_145 : f32 to vector<8x64xf32>
    %358 = arith.addf %356, %357 : vector<8x64xf32>
    %359 = vector.extract_strided_slice %353 {offsets = [0, 64], sizes = [8, 64], strides = [1, 1]} : vector<8x256xf32> to vector<8x64xf32>
    %cst_146 = arith.constant 5.000000e-01 : f32
    %360 = vector.broadcast %cst_146 : f32 to vector<8x64xf32>
    %361 = arith.mulf %360, %359 : vector<8x64xf32>
    %cst_147 = arith.constant 5.000000e-01 : f32
    %362 = vector.broadcast %cst_147 : f32 to vector<8x64xf32>
    %363 = arith.addf %361, %362 : vector<8x64xf32>
    %364 = vector.extract_strided_slice %353 {offsets = [0, 128], sizes = [8, 64], strides = [1, 1]} : vector<8x256xf32> to vector<8x64xf32>
    %365 = vector.extract_strided_slice %353 {offsets = [0, 192], sizes = [8, 64], strides = [1, 1]} : vector<8x256xf32> to vector<8x64xf32>
    %cst_148 = arith.constant 5.000000e-01 : f32
    %366 = vector.broadcast %cst_148 : f32 to vector<8x64xf32>
    %367 = arith.mulf %366, %365 : vector<8x64xf32>
    %cst_149 = arith.constant 5.000000e-01 : f32
    %368 = vector.broadcast %cst_149 : f32 to vector<8x64xf32>
    %369 = arith.addf %367, %368 : vector<8x64xf32>
    %370 = arith.mulf %363, %346 : vector<8x64xf32>
    %371 = arith.mulf %358, %364 : vector<8x64xf32>
    %372 = arith.addf %370, %371 : vector<8x64xf32>
    %373 = math.tanh %372 : vector<8x64xf32>
    %374 = arith.mulf %369, %373 : vector<8x64xf32>
    %c40_150 = arith.constant 40 : index
    %c0_151 = arith.constant 0 : index
    %375 = vector.load %arg11[%c40_150, %c0_151] : memref<64x256xf32, #tpu.memory_space<vmem>>, vector<8x256xf32>
    %376 = arith.truncf %374 : vector<8x64xf32> to vector<8x64xbf16>
    %cst_152 = arith.constant dense<0.000000e+00> : vector<8x256xf32>
    %377 = tpu.matmul %376, %242, %cst_152 {dimension_numbers = #tpu.dot_dimension_numbers<[1], [0], [0], [1], [0, 0, 1, 1], [], []>} : vector<8x64xbf16>, vector<64x256xbf16>, vector<8x256xf32> -> vector<8x256xf32>
    %378 = arith.addf %375, %377 : vector<8x256xf32>
    %379 = math.tanh %378 : vector<8x256xf32>
    %380 = vector.extract_strided_slice %379 {offsets = [0, 0], sizes = [8, 64], strides = [1, 1]} : vector<8x256xf32> to vector<8x64xf32>
    %cst_153 = arith.constant 5.000000e-01 : f32
    %381 = vector.broadcast %cst_153 : f32 to vector<8x64xf32>
    %382 = arith.mulf %381, %380 : vector<8x64xf32>
    %cst_154 = arith.constant 5.000000e-01 : f32
    %383 = vector.broadcast %cst_154 : f32 to vector<8x64xf32>
    %384 = arith.addf %382, %383 : vector<8x64xf32>
    %385 = vector.extract_strided_slice %379 {offsets = [0, 64], sizes = [8, 64], strides = [1, 1]} : vector<8x256xf32> to vector<8x64xf32>
    %cst_155 = arith.constant 5.000000e-01 : f32
    %386 = vector.broadcast %cst_155 : f32 to vector<8x64xf32>
    %387 = arith.mulf %386, %385 : vector<8x64xf32>
    %cst_156 = arith.constant 5.000000e-01 : f32
    %388 = vector.broadcast %cst_156 : f32 to vector<8x64xf32>
    %389 = arith.addf %387, %388 : vector<8x64xf32>
    %390 = vector.extract_strided_slice %379 {offsets = [0, 128], sizes = [8, 64], strides = [1, 1]} : vector<8x256xf32> to vector<8x64xf32>
    %391 = vector.extract_strided_slice %379 {offsets = [0, 192], sizes = [8, 64], strides = [1, 1]} : vector<8x256xf32> to vector<8x64xf32>
    %cst_157 = arith.constant 5.000000e-01 : f32
    %392 = vector.broadcast %cst_157 : f32 to vector<8x64xf32>
    %393 = arith.mulf %392, %391 : vector<8x64xf32>
    %cst_158 = arith.constant 5.000000e-01 : f32
    %394 = vector.broadcast %cst_158 : f32 to vector<8x64xf32>
    %395 = arith.addf %393, %394 : vector<8x64xf32>
    %396 = arith.mulf %389, %372 : vector<8x64xf32>
    %397 = arith.mulf %384, %390 : vector<8x64xf32>
    %398 = arith.addf %396, %397 : vector<8x64xf32>
    %399 = math.tanh %398 : vector<8x64xf32>
    %400 = arith.mulf %395, %399 : vector<8x64xf32>
    %c48_159 = arith.constant 48 : index
    %c0_160 = arith.constant 0 : index
    %401 = vector.load %arg11[%c48_159, %c0_160] : memref<64x256xf32, #tpu.memory_space<vmem>>, vector<8x256xf32>
    %402 = arith.truncf %400 : vector<8x64xf32> to vector<8x64xbf16>
    %cst_161 = arith.constant dense<0.000000e+00> : vector<8x256xf32>
    %403 = tpu.matmul %402, %242, %cst_161 {dimension_numbers = #tpu.dot_dimension_numbers<[1], [0], [0], [1], [0, 0, 1, 1], [], []>} : vector<8x64xbf16>, vector<64x256xbf16>, vector<8x256xf32> -> vector<8x256xf32>
    %404 = arith.addf %401, %403 : vector<8x256xf32>
    %405 = math.tanh %404 : vector<8x256xf32>
    %406 = vector.extract_strided_slice %405 {offsets = [0, 0], sizes = [8, 64], strides = [1, 1]} : vector<8x256xf32> to vector<8x64xf32>
    %cst_162 = arith.constant 5.000000e-01 : f32
    %407 = vector.broadcast %cst_162 : f32 to vector<8x64xf32>
    %408 = arith.mulf %407, %406 : vector<8x64xf32>
    %cst_163 = arith.constant 5.000000e-01 : f32
    %409 = vector.broadcast %cst_163 : f32 to vector<8x64xf32>
    %410 = arith.addf %408, %409 : vector<8x64xf32>
    %411 = vector.extract_strided_slice %405 {offsets = [0, 64], sizes = [8, 64], strides = [1, 1]} : vector<8x256xf32> to vector<8x64xf32>
    %cst_164 = arith.constant 5.000000e-01 : f32
    %412 = vector.broadcast %cst_164 : f32 to vector<8x64xf32>
    %413 = arith.mulf %412, %411 : vector<8x64xf32>
    %cst_165 = arith.constant 5.000000e-01 : f32
    %414 = vector.broadcast %cst_165 : f32 to vector<8x64xf32>
    %415 = arith.addf %413, %414 : vector<8x64xf32>
    %416 = vector.extract_strided_slice %405 {offsets = [0, 128], sizes = [8, 64], strides = [1, 1]} : vector<8x256xf32> to vector<8x64xf32>
    %417 = vector.extract_strided_slice %405 {offsets = [0, 192], sizes = [8, 64], strides = [1, 1]} : vector<8x256xf32> to vector<8x64xf32>
    %cst_166 = arith.constant 5.000000e-01 : f32
    %418 = vector.broadcast %cst_166 : f32 to vector<8x64xf32>
    %419 = arith.mulf %418, %417 : vector<8x64xf32>
    %cst_167 = arith.constant 5.000000e-01 : f32
    %420 = vector.broadcast %cst_167 : f32 to vector<8x64xf32>
    %421 = arith.addf %419, %420 : vector<8x64xf32>
    %422 = arith.mulf %415, %398 : vector<8x64xf32>
    %423 = arith.mulf %410, %416 : vector<8x64xf32>
    %424 = arith.addf %422, %423 : vector<8x64xf32>
    %425 = math.tanh %424 : vector<8x64xf32>
    %426 = arith.mulf %421, %425 : vector<8x64xf32>
    %c56_168 = arith.constant 56 : index
    %c0_169 = arith.constant 0 : index
    %427 = vector.load %arg11[%c56_168, %c0_169] : memref<64x256xf32, #tpu.memory_space<vmem>>, vector<8x256xf32>
    %428 = arith.truncf %426 : vector<8x64xf32> to vector<8x64xbf16>
    %cst_170 = arith.constant dense<0.000000e+00> : vector<8x256xf32>
    %429 = tpu.matmul %428, %242, %cst_170 {dimension_numbers = #tpu.dot_dimension_numbers<[1], [0], [0], [1], [0, 0, 1, 1], [], []>} : vector<8x64xbf16>, vector<64x256xbf16>, vector<8x256xf32> -> vector<8x256xf32>
    %430 = arith.addf %427, %429 : vector<8x256xf32>
    %431 = math.tanh %430 : vector<8x256xf32>
    %432 = vector.extract_strided_slice %431 {offsets = [0, 0], sizes = [8, 64], strides = [1, 1]} : vector<8x256xf32> to vector<8x64xf32>
    %cst_171 = arith.constant 5.000000e-01 : f32
    %433 = vector.broadcast %cst_171 : f32 to vector<8x64xf32>
    %434 = arith.mulf %433, %432 : vector<8x64xf32>
    %cst_172 = arith.constant 5.000000e-01 : f32
    %435 = vector.broadcast %cst_172 : f32 to vector<8x64xf32>
    %436 = arith.addf %434, %435 : vector<8x64xf32>
    %437 = vector.extract_strided_slice %431 {offsets = [0, 64], sizes = [8, 64], strides = [1, 1]} : vector<8x256xf32> to vector<8x64xf32>
    %cst_173 = arith.constant 5.000000e-01 : f32
    %438 = vector.broadcast %cst_173 : f32 to vector<8x64xf32>
    %439 = arith.mulf %438, %437 : vector<8x64xf32>
    %cst_174 = arith.constant 5.000000e-01 : f32
    %440 = vector.broadcast %cst_174 : f32 to vector<8x64xf32>
    %441 = arith.addf %439, %440 : vector<8x64xf32>
    %442 = vector.extract_strided_slice %431 {offsets = [0, 128], sizes = [8, 64], strides = [1, 1]} : vector<8x256xf32> to vector<8x64xf32>
    %443 = vector.extract_strided_slice %431 {offsets = [0, 192], sizes = [8, 64], strides = [1, 1]} : vector<8x256xf32> to vector<8x64xf32>
    %cst_175 = arith.constant 5.000000e-01 : f32
    %444 = vector.broadcast %cst_175 : f32 to vector<8x64xf32>
    %445 = arith.mulf %444, %443 : vector<8x64xf32>
    %cst_176 = arith.constant 5.000000e-01 : f32
    %446 = vector.broadcast %cst_176 : f32 to vector<8x64xf32>
    %447 = arith.addf %445, %446 : vector<8x64xf32>
    %448 = arith.mulf %441, %424 : vector<8x64xf32>
    %449 = arith.mulf %436, %442 : vector<8x64xf32>
    %450 = arith.addf %448, %449 : vector<8x64xf32>
    %451 = math.tanh %450 : vector<8x64xf32>
    %452 = arith.mulf %447, %451 : vector<8x64xf32>
    %453 = arith.truncf %452 : vector<8x64xf32> to vector<8x64xbf16>
    %c0_177 = arith.constant 0 : index
    %c0_178 = arith.constant 0 : index
    %454 = vector.load %arg8[%c0_177, %c0_178] : memref<64x128xbf16, #tpu.memory_space<vmem>>, vector<64x128xbf16>
    %cst_179 = arith.constant dense<0.000000e+00> : vector<8x128xf32>
    %455 = tpu.matmul %453, %454, %cst_179 {dimension_numbers = #tpu.dot_dimension_numbers<[1], [0], [0], [1], [0, 0, 1, 1], [], []>} : vector<8x64xbf16>, vector<64x128xbf16>, vector<8x128xf32> -> vector<8x128xf32>
    %c0_180 = arith.constant 0 : index
    %c0_181 = arith.constant 0 : index
    %456 = vector.load %arg9[%c0_180, %c0_181] : memref<1x128xf32, #tpu.memory_space<vmem>>, vector<1x128xf32>
    %457 = vector.broadcast %456 : vector<1x128xf32> to vector<8x128xf32>
    %458 = arith.addf %455, %457 : vector<8x128xf32>
    %c0_182 = arith.constant 0 : index
    %c0_183 = arith.constant 0 : index
    %459 = vector.load %arg10[%c0_182, %c0_183] : memref<8x128xf32, #tpu.memory_space<vmem>>, vector<8x128xf32>
    tpu.vector_store %arg10[%c0_182, %c0_183], %458 {strides = array<i32>} : memref<8x128xf32, #tpu.memory_space<vmem>>, vector<8x128xf32>,
    return
  }
  func.func @transform_0(%arg0: i32) -> (i32, i32) {
    %c0_i32 = arith.constant 0 : i32
    %c0_i32_0 = arith.constant 0 : i32
    %c0_i32_1 = arith.constant 0 : i32
    return %c0_i32, %c0_i32_0 : i32, i32
  }
  func.func @transform_1(%arg0: i32) -> (i32, i32) {
    %c0_i32 = arith.constant 0 : i32
    %c0_i32_0 = arith.constant 0 : i32
    %c0_i32_1 = arith.constant 0 : i32
    return %c0_i32, %c0_i32_0 : i32, i32
  }
  func.func @transform_2(%arg0: i32) -> (i32, i32) {
    %c0_i32 = arith.constant 0 : i32
    %c0_i32_0 = arith.constant 0 : i32
    %c0_i32_1 = arith.constant 0 : i32
    return %c0_i32, %c0_i32_0 : i32, i32
  }
  func.func @transform_3(%arg0: i32) -> (i32, i32) {
    %c0_i32 = arith.constant 0 : i32
    %c0_i32_0 = arith.constant 0 : i32
    %c0_i32_1 = arith.constant 0 : i32
    return %c0_i32, %c0_i32_0 : i32, i32
  }
  func.func @transform_4(%arg0: i32) -> (i32, i32) {
    %c0_i32 = arith.constant 0 : i32
    %c0_i32_0 = arith.constant 0 : i32
    %c0_i32_1 = arith.constant 0 : i32
    return %c0_i32, %c0_i32_0 : i32, i32
  }
  func.func @transform_5(%arg0: i32) -> (i32, i32) {
    %c0_i32 = arith.constant 0 : i32
    %c0_i32_0 = arith.constant 0 : i32
    %c0_i32_1 = arith.constant 0 : i32
    return %c0_i32, %c0_i32_0 : i32, i32
  }
  func.func @transform_6(%arg0: i32) -> (i32, i32) {
    %c0_i32 = arith.constant 0 : i32
    %c0_i32_0 = arith.constant 0 : i32
    %c0_i32_1 = arith.constant 0 : i32
    return %c0_i32, %c0_i32_0 : i32, i32
  }
  func.func @transform_7(%arg0: i32) -> (i32, i32) {
    %c0_i32 = arith.constant 0 : i32
    %c0_i32_0 = arith.constant 0 : i32
    %c0_i32_1 = arith.constant 0 : i32
    return %c0_i32, %c0_i32_0 : i32, i32
  }
  func.func @transform_8(%arg0: i32) -> (i32, i32) {
    %c0_i32 = arith.constant 0 : i32
    %c0_i32_0 = arith.constant 0 : i32
    %c0_i32_1 = arith.constant 0 : i32
    return %c0_i32, %c0_i32_0 : i32, i32
  }
  func.func @transform_9(%arg0: i32) -> (i32, i32) {
    %c0_i32 = arith.constant 0 : i32
    %c0_i32_0 = arith.constant 0 : i32
    %c0_i32_1 = arith.constant 0 : i32
    return %c0_i32, %c0_i32_0 : i32, i32
  }
}

</mosaic_0001>

<bundles_post_ra>
// kernel: model_forward.1
= control target key start
LH: loop header
LB: loop body
LE: loop exit
PB: predicated region body
PF: predicated region fallthrough
CT: control target
= control target key end

     0   :  { %14 = vsyncpa [#allocation5], 0  ;;  %s2363_s0 = inlined_call_operand.vmem [shape: f32[64,16], index: 0, kind: input, shape index: {}]   ;;  %s2364_s1 = inlined_call_operand.vmem [shape: bf16[16,256], index: 1, kind: input, shape index: {}]   ;;  %s2365_s2 = inlined_call_operand.vmem [shape: bf16[64,256], index: 2, kind: input, shape index: {}]   ;;  %s2366_s3 = inlined_call_operand.vmem [shape: f32[1,256], index: 3, kind: input, shape index: {}]   ;;  %s2367_s4 = inlined_call_operand.vmem [shape: bf16[64,256], index: 4, kind: input, shape index: {}]   ;;  %s2368_s5 = inlined_call_operand.vmem [shape: bf16[64,256], index: 5, kind: input, shape index: {}]   ;;  %s2369_s6 = inlined_call_operand.vmem [shape: f32[1,256], index: 6, kind: input, shape index: {}]   ;;  %s2370_s7 = inlined_call_operand.hbm [shape: bf16[64,128], index: 7, kind: input, shape index: {}]   ;;  %s2371_s8 = inlined_call_operand.hbm [shape: f32[1,128], index: 8, kind: input, shape index: {}]   ;;  %s2372_s9 = inlined_call_operand.vmem [shape: f32[8,128], index: 9, kind: output, shape index: {}]  }
   0x1   :  { %s34_s11 = sshll.u32 %s2370_s7, 4  ;;  %s35_s11 = int_to_ptr.hbm [resolvable:$true] %s34_s11 }
   0x2   :  { %15 = vsyncpa [#allocation7], 0  ;;  %s1747_s12 = smov [#allocation4]   ;;  %s48_s16 = sshll.u32 %s2371_s8, 4  ;;  %s49_s16 = int_to_ptr.hbm [resolvable:$true] %s48_s16 }
   0x3   :  { %s36_s13 = sshll.u32 %s1747_s12, 4  ;;  %s1748_s17 = smov 64   ;;  %s37_s13 = int_to_ptr.vmem [resolvable:$true] %s36_s13 }
   0x4   :  { %s1749_s18 = smov 4   ;;  %s1750_s19 = smov [#allocation6]  }
   0x5   :  { %42 = dma.hbm_to_vmem [thread:$0]  %s35_s11, 512, %s37_s13, [#allocation5], %s1748_s17, %s1748_s17, %s1749_s18  }
   0x6   :  { %s50_s20 = sshll.u32 %s1750_s19, 4  ;;  %s51_s20 = int_to_ptr.vmem [resolvable:$true] %s50_s20 }
   0x7   :  { %53 = dma.hbm_to_vmem [thread:$0]  %s49_s16, 16, %s51_s20, [#allocation7]  }
   0x8   :  { %1743 = dma.done.wait [#allocation5], 512  }
   0x9   :  { %1744 = vsyncadd [#allocation5], 4294966784 }
   0xa   :  { %1745 = dma.done.wait [#allocation7], 16  }
   0xb   :  { %1746 = vsyncadd [#allocation7], 4294967280  ;;  %v1420_v0 = vld [vmem:[%s2365_s2 + $0x30] sm:$0xf]  ;;  %v1568_v1 = vld [vmem:[%s2365_s2 + $0x34] sm:$0xf0] }
   0xc   :  { %v1567_v2 = vld [vmem:[%s2365_s2 + $0x34] sm:$0xf]  ;;  %v1819_v3 = vor.u32 %v1568_v1, %v1420_v0  ;;  %v1422_v4 = vld [vmem:[%s2365_s2 + $0x38] sm:$0xf0]  ;;  %v1412_v5 = vld [vmem:[%s2365_s2 + $0x20] sm:$0xf] }
   0xd   :  { %v1566_v6 = vld [vmem:[%s2365_s2 + $0x24] sm:$0xf0]  ;;  %v1830_v7 = vor.u32 %v1567_v2, %v1422_v4  ;;  %v1565_v8 = vld [vmem:[%s2365_s2 + $0x24] sm:$0xf]  ;;  %v1414_v9 = vld [vmem:[%s2365_s2 + $0x28] sm:$0xf0] }
   0xe   :  { %v1380_v10 = vld [vmem:[%s2364_s1] sm:$0xf]  ;;  %238 = vmatpush.bf16.msra.mxu2 %v1819_v3  ;;  %v1842_v11 = vor.u32 %v1566_v6, %v1412_v5  ;;  %v1560_v12 = vld [vmem:[%s2364_s1 + $0x4] sm:$0xf0]  ;;  %v1404_v13 = vld [vmem:[%s2365_s2 + $0x10] sm:$0xf]  ;;  %v1854_v15 = vor.u32 %v1565_v8, %v1414_v9 }
   0xf   :  { %v1564_v14 = vld [vmem:[%s2365_s2 + $0x14] sm:$0xf0]  ;;  %251 = vmatpush.bf16.msra.mxu3 %v1830_v7  ;;  %v1381_v16 = vor.u32 %v1560_v12, %v1380_v10  ;;  %v1563_v17 = vld [vmem:[%s2365_s2 + $0x14] sm:$0xf]  ;;  %v1406_v18 = vld [vmem:[%s2365_s2 + $0x18] sm:$0xf0] }
  0x10   :  { %v63_v19 = vld [vmem:[%s2363_s0] sm:$0xff]  ;;  %v64_v20 = vld [vmem:[%s2363_s0 + $0x8] sm:$0xff]  ;;  %vm93_vm0 = vcmask 130048   ;;  %v1875_v25 = vor.u32 %v1564_v14, %v1404_v13  ;;  %v1879_v26 = vor.u32 %v1563_v17, %v1406_v18  ;;  %v1751_v33 = vmov 0   ;;  %v65_v18 = vld [vmem:[%s2363_s0 + $0x10] sm:$0xff] }
  0x11   :  { %v1559_v21 = vld [vmem:[%s2364_s1 + $0x4] sm:$0xf]  ;;  %v1382_v22 = vld [vmem:[%s2364_s1 + $0x8] sm:$0xf0]  ;;  %113 = vmatpush.bf16.msra.mxu0 %v1381_v16  ;;  %v71_v23 = vpack.c.bf16 %v64_v20, %v63_v19  ;;  %v1396_v27 = vld [vmem:[%s2365_s2] sm:$0xf] }
  0x12   :  { %v1385_v24 = vor.u32 %v1559_v21, %v1382_v22  ;;  %239 = vmatpush.bf16.msra.mxu2 %v1842_v11  ;;  %v1562_v28 = vld [vmem:[%s2365_s2 + $0x4] sm:$0xf0]  ;;  %v1561_v29 = vld [vmem:[%s2365_s2 + $0x4] sm:$0xf]  ;;  %v1398_v30 = vld [vmem:[%s2365_s2 + $0x8] sm:$0xf0] }
  0x13   :  { %252 = vmatpush.bf16.msra.mxu3 %v1854_v15  ;;  %v1896_v31 = vor.u32 %v1562_v28, %v1396_v27  ;;  %v1900_v32 = vor.u32 %v1561_v29, %v1398_v30  ;;  %v77_v34 = vld [vmem:[%s2366_s3] sm:$0x3]  ;;  %vm230_vm1 = vcmask 523264   ;;  %v66_v19 = vld [vmem:[%s2363_s0 + $0x18] sm:$0xff]  ;;  %vm282_vm2 = vcmask 519168  }
  0x14   :  { %142 = vmatpush.bf16.msra.mxu1 %v1385_v24  ;;  %1386 = vmatmul.msk.bf16.vlgmr.msra.gmra.mxu0 %vm93_vm0, %v71_v23  ;;  %v1939_v35 = vperm.slane %v77_v34, 0  ;;  %v1941_v36 = vperm.slane %v77_v34, 1  ;;  %v72_v20 = vpack.c.bf16 %v66_v19, %v65_v18 }
  0x15   :  { %471 = vmatpush.bf16.msrb.mxu0 %v1819_v3 }
  0x16   :  { %240 = vmatpush.bf16.msra.mxu2 %v1875_v25 }
  0x17   :  { %1390 = vmatmul.msk.bf16.vlgmr.msra.gmra.mxu1 %vm93_vm0, %v71_v23  ;;  %253 = vmatpush.bf16.msra.mxu3 %v1879_v26 }
  0x18   :  { %484 = vmatpush.bf16.msrb.mxu1 %v1830_v7 }
  0x19   :  { %472 = vmatpush.bf16.msrb.mxu0 %v1842_v11 }
  0x1a   :  { %241 = vmatpush.bf16.msra.mxu2 %v1896_v31 }
  0x1b   :  { %254 = vmatpush.bf16.msra.mxu3 %v1900_v32 }
  0x1c   :  { %485 = vmatpush.bf16.msrb.mxu1 %v1854_v15 }
  0x1d   :  { %473 = vmatpush.bf16.msrb.mxu0 %v1875_v25  ;;  %242 = vmatmul.bf16.vlgmr.msra.gmra.mxu2 %v1751_v33 }
  0x1e   :  { %297 = vmatpush.bf16.msrb.mxu2 %v1819_v3  ;;  %255 = vmatmul.bf16.vlgmr.msra.gmra.mxu3 %v1751_v33 }
  0x1f   :  { %310 = vmatpush.bf16.msrb.mxu3 %v1830_v7 }
  0x20   :  { %486 = vmatpush.bf16.msrb.mxu1 %v1879_v26 }
  0x21   :  { %474 = vmatpush.bf16.msrb.mxu0 %v1896_v31 }
  0x22   :  { %298 = vmatpush.bf16.msrb.mxu2 %v1842_v11 }
  0x23   :  { %311 = vmatpush.bf16.msrb.mxu3 %v1854_v15 }
  0x24   :  { %487 = vmatpush.bf16.msrb.mxu1 %v1900_v32  ;;  %1387 = vmatmul.msk.bf16.gmra.mxu0 %vm93_vm0, %v72_v20 }
  0x25   :  { %587 = vmatpush.bf16.msra.mxu0 %v1819_v3 }
  0x26   :  { %299 = vmatpush.bf16.msrb.mxu2 %v1875_v25 }
  0x27   :  { %312 = vmatpush.bf16.msrb.mxu3 %v1879_v26  ;;  %1391 = vmatmul.msk.bf16.gmra.mxu1 %vm93_vm0, %v72_v20 }
  0x28   :  { %600 = vmatpush.bf16.msra.mxu1 %v1830_v7 }
  0x29   :  { %588 = vmatpush.bf16.msra.mxu0 %v1842_v11 }
  0x2a   :  { %300 = vmatpush.bf16.msrb.mxu2 %v1896_v31 }
  0x2b   :  { %313 = vmatpush.bf16.msrb.mxu3 %v1900_v32 }
  0x2c   :  { %601 = vmatpush.bf16.msra.mxu1 %v1854_v15 }
  0x2d   :  { %589 = vmatpush.bf16.msra.mxu0 %v1875_v25 }
  0x2e   :  { %355 = vmatpush.bf16.msra.mxu2 %v1819_v3 }
  0x2f   :  { %368 = vmatpush.bf16.msra.mxu3 %v1830_v7 }
  0x30   :  { %602 = vmatpush.bf16.msra.mxu1 %v1879_v26 }
  0x31   :  { %590 = vmatpush.bf16.msra.mxu0 %v1896_v31 }
  0x32   :  { %356 = vmatpush.bf16.msra.mxu2 %v1842_v11 }
  0x33   :  { %369 = vmatpush.bf16.msra.mxu3 %v1854_v15 }
  0x34   :  { %603 = vmatpush.bf16.msra.mxu1 %v1900_v32 }
  0x36   :  { %357 = vmatpush.bf16.msra.mxu2 %v1875_v25 }
  0x37   :  { %370 = vmatpush.bf16.msra.mxu3 %v1879_v26 }
  0x3a   :  { %358 = vmatpush.bf16.msra.mxu2 %v1896_v31 }
  0x3b   :  { %371 = vmatpush.bf16.msra.mxu3 %v1900_v32 }
  0x91   :  { %v115_v37 = vpop.f32.mrf.mxu0 }
  0x92   :  { %v116_v38 = vadd.f32 %v115_v37, %v1939_v35 }
  0x94   :  { %v144_v39 = vpop.f32.mrf.mxu1 }
  0x95   :  { %v145_v40 = vadd.f32 %v144_v39, %v1941_v36 }
  0x99   :  { %v117_v63 = vpop.f32.mrf.mxu0 }
  0x9a   :  { %v118_v1 = vadd.f32 %v117_v63, %v1939_v35 }
  0x9c   :  { %v146_v0 = vpop.f32.mrf.mxu1 }
  0x9d   :  { %v147_v5 = vadd.f32 %v146_v0, %v1941_v36 }
  0xa0   :  { %v243_v41 = vpop.f32.mrf.mxu2 }
  0xa1   :  { %v260_v42 = vadd.f32 %v243_v41, %v116_v38  ;;  %v256_v43 = vpop.f32.mrf.mxu3  ;;  %v120_v39 = vpop.f32.mrf.mxu0 }
  0xa2   :  { %v261_v44 = vadd.f32 %v256_v43, %v145_v40  ;;  %v121_v40 = vadd.f32 %v120_v39, %v1939_v35 }
  0xa3   :  { %1599 = vtanh.f32 %v260_v42 }
  0xa4   :  { %1601 = vtanh.f32 %v261_v44  ;;  %v149_v41 = vpop.f32.mrf.mxu1 }
  0xa5   :  { %v150_v42 = vadd.f32 %v149_v41, %v1941_v36 }
  0xa8   :  { %v245_v45 = vpop.f32.mrf.mxu2 }
  0xa9   :  { %v1600_v46 = vpop.eup %1599  ;;  %v258_v47 = vpop.f32.mrf.mxu3 }
  0xaa   :  { %v264_v48 = vmul.f32 0.5, %v1600_v46  ;;  %v1602_v49 = vpop.eup %1601 }
  0xab   :  { %v266_v55 = vmul.f32 0.5, %v1602_v49 }
  0xac   :  { %v265_v50 = vadd.f32 0.5, %v264_v48 }
  0xad   :  { %v267_v56 = vadd.f32 0.5, %v266_v55 }
  0xae   :  { %v269_v51 = vmul.f32 %v1602_v49, %v265_v50  ;;  %v268_v52 = vmul.f32 0.0, %v265_v50 }
  0xb0   :  { %271 = vrot.lane.b32.xlu0 %v269_v51, %s1748_s17 }
 0x122   :  { %v272_v53 = vpop.permute.xlu0 %271 }
 0x123   :  { %v274_v54 = vadd.f32 %v272_v53, %v268_v52 }
 0x125   :  { %1603 = vtanh.f32 %v274_v54 }
 0x12b   :  { %v1604_v57 = vpop.eup %1603 }
 0x12c   :  { %v276_v58 = vmul.f32 %v1604_v57, %v267_v56 }
 0x12e   :  { %v1946_v59 = vpack.c.bf16 %v276_v58, %v276_v58 }
 0x130   :  { %v286_v60 = vunpack.c.l.b16 %v1946_v59 }
 0x132   :  { %v287_v61 = vpack.c.b16 %v286_v60, %v286_v60 }
 0x134   :  { %288 = vrot.lane.b32.xlu0 %v287_v61, %s1748_s17 }
 0x1a6   :  { %v289_v62 = vpop.permute.xlu0 %288 }
 0x1a7   :  { %1426 = vmatmul.msk.bf16.vlgmr.msrb.gmra.mxu2 %vm230_vm1, %v289_v62  ;;  %1427 = vmatmul.msk.bf16.vlgmr.msrb.gmra.mxu3 %vm230_vm1, %v289_v62 }
 0x1a8   :  { %413 = vmatpush.bf16.msrb.mxu2 %v1819_v3  ;;  %426 = vmatpush.bf16.msrb.mxu3 %v1830_v7 }
 0x1ac   :  { %414 = vmatpush.bf16.msrb.mxu2 %v1842_v11  ;;  %427 = vmatpush.bf16.msrb.mxu3 %v1854_v15 }
 0x1b0   :  { %415 = vmatpush.bf16.msrb.mxu2 %v1875_v25  ;;  %428 = vmatpush.bf16.msrb.mxu3 %v1879_v26 }
 0x1b4   :  { %416 = vmatpush.bf16.msrb.mxu2 %v1896_v31  ;;  %429 = vmatpush.bf16.msrb.mxu3 %v1900_v32 }
 0x22a   :  { %v302_v2 = vpop.f32.mrf.mxu2  ;;  %v315_v4 = vpop.f32.mrf.mxu3 }
 0x22b   :  { %v319_v6 = vadd.f32 %v302_v2, %v118_v1  ;;  %v320_v8 = vadd.f32 %v315_v4, %v147_v5  ;;  %v122_v2 = vpop.f32.mrf.mxu0  ;;  %v151_v4 = vpop.f32.mrf.mxu1 }
 0x22c   :  { %v123_v5 = vadd.f32 %v122_v2, %v1939_v35 }
 0x22d   :  { %1605 = vtanh.f32 %v319_v6 }
 0x22e   :  { %1607 = vtanh.f32 %v320_v8 }
 0x232   :  { %v304_v9 = vpop.f32.mrf.mxu2  ;;  %v317_v10 = vpop.f32.mrf.mxu3 }
 0x233   :  { %v1606_v12 = vpop.eup %1605 }
 0x234   :  { %v323_v13 = vmul.f32 0.5, %v1606_v12  ;;  %v1608_v16 = vpop.eup %1607 }
 0x235   :  { %v325_v24 = vmul.f32 0.5, %v1608_v16 }
 0x236   :  { %v324_v14 = vadd.f32 0.5, %v323_v13  ;;  %v68_v13 = vld [vmem:[%s2363_s0 + $0x28] sm:$0xff] }
 0x237   :  { %v326_v27 = vadd.f32 0.5, %v325_v24 }
 0x238   :  { %v328_v17 = vmul.f32 %v1608_v16, %v324_v14  ;;  %v327_v21 = vmul.f32 %v324_v14, %v274_v54  ;;  %v69_v16 = vld [vmem:[%s2363_s0 + $0x30] sm:$0xff] }
 0x23a   :  { %330 = vrot.lane.b32.xlu1 %v328_v17, %s1748_s17  ;;  %v70_v17 = vld [vmem:[%s2363_s0 + $0x38] sm:$0xff] }
 0x2ac   :  { %v331_v22 = vpop.permute.xlu1 %330 }
 0x2ad   :  { %v333_v23 = vadd.f32 %v331_v22, %v327_v21  ;;  %v74_v21 = vpack.c.bf16 %v70_v17, %v69_v16 }
 0x2af   :  { %1609 = vtanh.f32 %v333_v23 }
 0x2b5   :  { %v1610_v28 = vpop.eup %1609 }
 0x2b6   :  { %v335_v29 = vmul.f32 %v1610_v28, %v326_v27 }
 0x2b8   :  { %v1971_v30 = vpack.c.bf16 %v335_v29, %v335_v29 }
 0x2ba   :  { %v344_v34 = vunpack.c.l.b16 %v1971_v30 }
 0x2bc   :  { %v345_v37 = vpack.c.b16 %v344_v34, %v344_v34 }
 0x2be   :  { %346 = vrot.lane.b32.xlu1 %v345_v37, %s1748_s17 }
 0x330   :  { %v347_v38 = vpop.permute.xlu1 %346 }
 0x331   :  { %1428 = vmatmul.msk.bf16.vlgmr.msra.gmra.mxu2 %vm230_vm1, %v347_v38  ;;  %1429 = vmatmul.msk.bf16.vlgmr.msra.gmra.mxu3 %vm230_vm1, %v347_v38 }
 0x332   :  { %529 = vmatpush.bf16.msra.mxu2 %v1819_v3  ;;  %542 = vmatpush.bf16.msra.mxu3 %v1830_v7 }
 0x336   :  { %530 = vmatpush.bf16.msra.mxu2 %v1842_v11  ;;  %543 = vmatpush.bf16.msra.mxu3 %v1854_v15 }
 0x33a   :  { %531 = vmatpush.bf16.msra.mxu2 %v1875_v25  ;;  %544 = vmatpush.bf16.msra.mxu3 %v1879_v26 }
 0x33e   :  { %532 = vmatpush.bf16.msra.mxu2 %v1896_v31  ;;  %545 = vmatpush.bf16.msra.mxu3 %v1900_v32 }
 0x3b4   :  { %v360_v43 = vpop.f32.mrf.mxu2  ;;  %v373_v44 = vpop.f32.mrf.mxu3 }
 0x3b5   :  { %v377_v45 = vadd.f32 %v360_v43, %v121_v40  ;;  %v378_v46 = vadd.f32 %v373_v44, %v150_v42 }
 0x3b7   :  { %1611 = vtanh.f32 %v377_v45 }
 0x3b8   :  { %1613 = vtanh.f32 %v378_v46 }
 0x3bc   :  { %v362_v47 = vpop.f32.mrf.mxu2  ;;  %v375_v48 = vpop.f32.mrf.mxu3 }
 0x3bd   :  { %v1612_v49 = vpop.eup %1611 }
 0x3be   :  { %v381_v50 = vmul.f32 0.5, %v1612_v49  ;;  %v1614_v52 = vpop.eup %1613 }
 0x3bf   :  { %v383_v57 = vmul.f32 0.5, %v1614_v52 }
 0x3c0   :  { %v382_v51 = vadd.f32 0.5, %v381_v50 }
 0x3c1   :  { %v384_v58 = vadd.f32 0.5, %v383_v57 }
 0x3c2   :  { %v386_v53 = vmul.f32 %v1614_v52, %v382_v51  ;;  %v385_v54 = vmul.f32 %v382_v51, %v333_v23 }
 0x3c4   :  { %388 = vrot.lane.b32.xlu2 %v386_v53, %s1748_s17 }
 0x41e   :  { %v389_v55 = vpop.permute.xlu2 %388 }
 0x41f   :  { %v391_v56 = vadd.f32 %v389_v55, %v385_v54 }
 0x421   :  { %1615 = vtanh.f32 %v391_v56 }
 0x427   :  { %v1616_v60 = vpop.eup %1615 }
 0x428   :  { %v393_v61 = vmul.f32 %v1616_v60, %v384_v58 }
 0x42a   :  { %v1988_v62 = vpack.c.bf16 %v393_v61, %v393_v61 }
 0x42c   :  { %v402_v63 = vunpack.c.l.b16 %v1988_v62 }
 0x42e   :  { %v403_v0 = vpack.c.b16 %v402_v63, %v402_v63 }
 0x430   :  { %404 = vrot.lane.b32.xlu2 %v403_v0, %s1748_s17 }
 0x48a   :  { %v405_v1 = vpop.permute.xlu2 %404 }
 0x48b   :  { %1430 = vmatmul.msk.bf16.vlgmr.msrb.gmra.mxu2 %vm230_vm1, %v405_v1  ;;  %1431 = vmatmul.msk.bf16.vlgmr.msrb.gmra.mxu3 %vm230_vm1, %v405_v1 }
 0x48c   :  { %645 = vmatpush.bf16.msrb.mxu2 %v1819_v3  ;;  %658 = vmatpush.bf16.msrb.mxu3 %v1830_v7  ;;  %v152_v7 = vadd.f32 %v151_v4, %v1941_v36 }
 0x490   :  { %646 = vmatpush.bf16.msrb.mxu2 %v1842_v11  ;;  %659 = vmatpush.bf16.msrb.mxu3 %v1854_v15 }
 0x494   :  { %647 = vmatpush.bf16.msrb.mxu2 %v1875_v25  ;;  %660 = vmatpush.bf16.msrb.mxu3 %v1879_v26 }
 0x498   :  { %648 = vmatpush.bf16.msrb.mxu2 %v1896_v31  ;;  %661 = vmatpush.bf16.msrb.mxu3 %v1900_v32  ;;  %v67_v32 = vld [vmem:[%s2363_s0 + $0x20] sm:$0xff] }
 0x499   :  { %v73_v14 = vpack.c.bf16 %v68_v13, %v67_v32 }
 0x49b   :  { %1388 = vmatmul.msk.bf16.gmra.mxu0 %vm93_vm0, %v73_v14  ;;  %1392 = vmatmul.msk.bf16.gmra.mxu1 %vm93_vm0, %v73_v14 }
 0x4ab   :  { %1389 = vmatmul.msk.bf16.gmra.mxu0 %vm93_vm0, %v74_v21  ;;  %1393 = vmatmul.msk.bf16.gmra.mxu1 %vm93_vm0, %v74_v21 }
 0x50e   :  { %v418_v6 = vpop.f32.mrf.mxu2  ;;  %v431_v3 = vpop.f32.mrf.mxu3 }
 0x50f   :  { %v435_v8 = vadd.f32 %v418_v6, %v123_v5  ;;  %v436_v11 = vadd.f32 %v431_v3, %v152_v7 }
 0x511   :  { %1617 = vtanh.f32 %v435_v8 }
 0x512   :  { %1619 = vtanh.f32 %v436_v11 }
 0x516   :  { %v420_v15 = vpop.f32.mrf.mxu2  ;;  %v433_v25 = vpop.f32.mrf.mxu3 }
 0x517   :  { %v1618_v9 = vpop.eup %1617 }
 0x518   :  { %v439_v26 = vmul.f32 0.5, %v1618_v9  ;;  %v1620_v31 = vpop.eup %1619  ;;  %v125_v38 = vpop.f32.mrf.mxu0 }
 0x519   :  { %v441_v22 = vmul.f32 0.5, %v1620_v31  ;;  %v154_v39 = vpop.f32.mrf.mxu1  ;;  %v126_v46 = vadd.f32 %v125_v38, %v1939_v35 }
 0x51a   :  { %v440_v10 = vadd.f32 0.5, %v439_v26  ;;  %v155_v49 = vadd.f32 %v154_v39, %v1941_v36 }
 0x51b   :  { %v442_v23 = vadd.f32 0.5, %v441_v22 }
 0x51c   :  { %v444_v12 = vmul.f32 %v1620_v31, %v440_v10  ;;  %v443_v18 = vmul.f32 %v440_v10, %v391_v56 }
 0x51e   :  { %446 = vrot.lane.b32.xlu0 %v444_v12, %s1748_s17 }
 0x520   :  { %v127_v40 = vpop.f32.mrf.mxu0 }
 0x521   :  { %v156_v41 = vpop.f32.mrf.mxu1  ;;  %v128_v8 = vadd.f32 %v127_v40, %v1939_v35 }
 0x522   :  { %v157_v25 = vadd.f32 %v156_v41, %v1941_v36 }
 0x528   :  { %v2027_v42 = vpop.f32.mrf.mxu0 }
 0x529   :  { %v2029_v43 = vpop.f32.mrf.mxu1  ;;  %v131_v38 = vadd.f32 %v2027_v42, %v1939_v35  ;;  %v1482_v42 = vld [vmem:[%s2367_s4 + $0x30] sm:$0xf] }
 0x52a   :  { %v160_v41 = vadd.f32 %v2029_v43, %v1941_v36  ;;  %v1580_v43 = vld [vmem:[%s2367_s4 + $0x34] sm:$0xf0] }
 0x530   :  { %v2031_v44 = vpop.f32.mrf.mxu0 }
 0x531   :  { %v2033_v45 = vpop.f32.mrf.mxu1 }
 0x590   :  { %v447_v19 = vpop.permute.xlu0 %446 }
 0x591   :  { %v449_v20 = vadd.f32 %v447_v19, %v443_v18 }
 0x593   :  { %1621 = vtanh.f32 %v449_v20 }
 0x599   :  { %v1622_v24 = vpop.eup %1621 }
 0x59a   :  { %v451_v27 = vmul.f32 %v1622_v24, %v442_v23 }
 0x59c   :  { %v2021_v28 = vpack.c.bf16 %v451_v27, %v451_v27 }
 0x59e   :  { %v460_v29 = vunpack.c.l.b16 %v2021_v28 }
 0x5a0   :  { %v461_v34 = vpack.c.b16 %v460_v29, %v460_v29 }
 0x5a2   :  { %462 = vrot.lane.b32.xlu1 %v461_v34, %s1748_s17 }
 0x614   :  { %v463_v37 = vpop.permute.xlu1 %462 }
 0x615   :  { %1432 = vmatmul.msk.bf16.vlgmr.msrb.gmra.mxu0 %vm230_vm1, %v463_v37  ;;  %1433 = vmatmul.msk.bf16.vlgmr.msrb.gmra.mxu1 %vm230_vm1, %v463_v37 }
 0x692   :  { %v476_v47 = vpop.f32.mrf.mxu0  ;;  %v489_v48 = vpop.f32.mrf.mxu1 }
 0x693   :  { %v493_v50 = vadd.f32 %v476_v47, %v126_v46  ;;  %v494_v51 = vadd.f32 %v489_v48, %v155_v49 }
 0x695   :  { %1623 = vtanh.f32 %v493_v50 }
 0x696   :  { %1625 = vtanh.f32 %v494_v51 }
 0x69a   :  { %v478_v52 = vpop.f32.mrf.mxu0  ;;  %v491_v53 = vpop.f32.mrf.mxu1 }
 0x69b   :  { %v1624_v54 = vpop.eup %1623 }
 0x69c   :  { %v497_v55 = vmul.f32 0.5, %v1624_v54  ;;  %v1626_v57 = vpop.eup %1625  ;;  %v1579_v54 = vld [vmem:[%s2367_s4 + $0x34] sm:$0xf] }
 0x69d   :  { %v499_v0 = vmul.f32 0.5, %v1626_v57 }
 0x69e   :  { %v498_v56 = vadd.f32 0.5, %v497_v55  ;;  %v1483_v55 = vor.u32 %v1580_v43, %v1482_v42  ;;  %v1582_v42 = vld [vmem:[%s2368_s5 + $0x4] sm:$0xf0]  ;;  %v1581_v43 = vld [vmem:[%s2368_s5 + $0x4] sm:$0xf] }
 0x69f   :  { %v500_v1 = vadd.f32 0.5, %v499_v0 }
 0x6a0   :  { %v502_v58 = vmul.f32 %v1626_v57, %v498_v56  ;;  %v501_v60 = vmul.f32 %v498_v56, %v449_v20  ;;  %v1484_v56 = vld [vmem:[%s2367_s4 + $0x38] sm:$0xf0]  ;;  %788 = vmatpush.bf16.msrb.mxu0 %v1483_v55  ;;  %v1500_v55 = vld [vmem:[%s2368_s5 + $0x8] sm:$0xf0] }
 0x6a1   :  { %v1487_v57 = vor.u32 %v1579_v54, %v1484_v56  ;;  %v2199_v56 = vor.u32 %v1581_v43, %v1500_v55 }
 0x6a2   :  { %504 = vrot.lane.b32.xlu2 %v502_v58, %s1748_s17  ;;  %v1578_v58 = vld [vmem:[%s2367_s4 + $0x24] sm:$0xf0] }
 0x6a3   :  { %817 = vmatpush.bf16.msrb.mxu1 %v1487_v57 }
 0x6fc   :  { %v505_v61 = vpop.permute.xlu2 %504 }
 0x6fd   :  { %v507_v63 = vadd.f32 %v505_v61, %v501_v60  ;;  %v1577_v60 = vld [vmem:[%s2367_s4 + $0x24] sm:$0xf] }
 0x6ff   :  { %1627 = vtanh.f32 %v507_v63 }
 0x705   :  { %v1628_v2 = vpop.eup %1627 }
 0x706   :  { %v509_v4 = vmul.f32 %v1628_v2, %v500_v1  ;;  %v1466_v1 = vld [vmem:[%s2367_s4 + $0x10] sm:$0xf]  ;;  %v1576_v2 = vld [vmem:[%s2367_s4 + $0x14] sm:$0xf0] }
 0x708   :  { %v2038_v5 = vpack.c.bf16 %v509_v4, %v509_v4  ;;  %v1575_v4 = vld [vmem:[%s2367_s4 + $0x14] sm:$0xf] }
 0x70a   :  { %v518_v6 = vunpack.c.l.b16 %v2038_v5 }
 0x70c   :  { %v519_v3 = vpack.c.b16 %v518_v6, %v518_v6  ;;  %v1467_v6 = vor.u32 %v1576_v2, %v1466_v1 }
 0x70e   :  { %520 = vrot.lane.b32.xlu0 %v519_v3, %s1748_s17  ;;  %v1468_v3 = vld [vmem:[%s2367_s4 + $0x18] sm:$0xf0] }
 0x780   :  { %v521_v7 = vpop.permute.xlu0 %520 }
 0x781   :  { %1434 = vmatmul.msk.bf16.vlgmr.msra.gmra.mxu2 %vm230_vm1, %v521_v7  ;;  %1435 = vmatmul.msk.bf16.vlgmr.msra.gmra.mxu3 %vm230_vm1, %v521_v7  ;;  %v1458_v7 = vld [vmem:[%s2367_s4] sm:$0xf] }
 0x804   :  { %v534_v11 = vpop.f32.mrf.mxu2  ;;  %v547_v15 = vpop.f32.mrf.mxu3 }
 0x805   :  { %v551_v9 = vadd.f32 %v534_v11, %v128_v8  ;;  %v552_v26 = vadd.f32 %v547_v15, %v157_v25  ;;  %v1574_v8 = vld [vmem:[%s2367_s4 + $0x4] sm:$0xf0]  ;;  %v1471_v11 = vor.u32 %v1575_v4, %v1468_v3  ;;  %v1573_v15 = vld [vmem:[%s2367_s4 + $0x4] sm:$0xf]  ;;  %v1460_v25 = vld [vmem:[%s2367_s4 + $0x8] sm:$0xf0] }
 0x807   :  { %1629 = vtanh.f32 %v551_v9  ;;  %v1459_v9 = vor.u32 %v1574_v8, %v1458_v7 }
 0x808   :  { %1631 = vtanh.f32 %v552_v26  ;;  %v1463_v26 = vor.u32 %v1573_v15, %v1460_v25 }
 0x80c   :  { %v536_v10 = vpop.f32.mrf.mxu2  ;;  %v549_v31 = vpop.f32.mrf.mxu3 }
 0x80d   :  { %v1630_v12 = vpop.eup %1629 }
 0x80e   :  { %v555_v32 = vmul.f32 0.5, %v1630_v12  ;;  %v1632_v14 = vpop.eup %1631 }
 0x80f   :  { %v557_v20 = vmul.f32 0.5, %v1632_v14 }
 0x810   :  { %v556_v13 = vadd.f32 0.5, %v555_v32 }
 0x811   :  { %v558_v21 = vadd.f32 0.5, %v557_v20 }
 0x812   :  { %v560_v16 = vmul.f32 %v1632_v14, %v556_v13  ;;  %v559_v17 = vmul.f32 %v556_v13, %v507_v63  ;;  %v1476_v63 = vld [vmem:[%s2367_s4 + $0x28] sm:$0xf0] }
 0x813   :  { %v1479_v0 = vor.u32 %v1577_v60, %v1476_v63  ;;  %v162_v60 = vadd.f32 %v2033_v45, %v1941_v36 }
 0x814   :  { %562 = vrot.lane.b32.xlu1 %v560_v16, %s1748_s17 }
 0x815   :  { %818 = vmatpush.bf16.msrb.mxu1 %v1479_v0  ;;  %v706_v0 = vld [vmem:[%s2369_s6] sm:$0x3] }
 0x816   :  { %v2240_v3 = vperm.slane %v706_v0, 0  ;;  %v2246_v36 = vperm.slane %v706_v0, 1 }
 0x819   :  { %819 = vmatpush.bf16.msrb.mxu1 %v1471_v11 }
 0x81d   :  { %820 = vmatpush.bf16.msrb.mxu1 %v1463_v26 }
 0x886   :  { %v563_v18 = vpop.permute.xlu1 %562 }
 0x887   :  { %v2047_v19 = vadd.f32 %v563_v18, %v559_v17 }
 0x889   :  { %1633 = vtanh.f32 %v2047_v19 }
 0x88f   :  { %v1634_v22 = vpop.eup %1633 }
 0x890   :  { %v567_v23 = vmul.f32 %v1634_v22, %v558_v21 }
 0x892   :  { %v2050_v24 = vpack.c.bf16 %v567_v23, %v567_v23  ;;  %v1588_v23 = vld [vmem:[%s2368_s5 + $0x34] sm:$0xf0] }
 0x894   :  { %v576_v27 = vunpack.c.l.b16 %v2050_v24 }
 0x896   :  { %v577_v29 = vpack.c.b16 %v576_v27, %v576_v27  ;;  %v1587_v27 = vld [vmem:[%s2368_s5 + $0x34] sm:$0xf] }
 0x898   :  { %578 = vrot.lane.b32.xlu2 %v577_v29, %s1748_s17 }
 0x8a0   :  { %279 = vrot.lane.b32.xlu2 %v1946_v59, %s1748_s17 }
 0x8f2   :  { %v579_v34 = vpop.permute.xlu2 %578 }
 0x8f3   :  { %1436 = vmatmul.msk.bf16.vlgmr.msra.gmra.mxu0 %vm230_vm1, %v579_v34  ;;  %1437 = vmatmul.msk.bf16.vlgmr.msra.gmra.mxu1 %vm230_vm1, %v579_v34  ;;  %v1524_v34 = vld [vmem:[%s2368_s5 + $0x38] sm:$0xf0] }
 0x8fa   :  { %v280_v37 = vpop.permute.xlu2 %279 }
 0x8fb   :  { %283 = vst.msk [vmem:[#allocation3] sm:$0xf] %vm282_vm2, %v280_v37  ;;  %v1514_v37 = vld [vmem:[%s2368_s5 + $0x20] sm:$0xf] }
 0x970   :  { %v592_v39 = vpop.f32.mrf.mxu0  ;;  %v605_v40 = vpop.f32.mrf.mxu1 }
 0x971   :  { %v609_v46 = vadd.f32 %v592_v39, %v131_v38  ;;  %v610_v59 = vadd.f32 %v605_v40, %v160_v41  ;;  %v1586_v38 = vld [vmem:[%s2368_s5 + $0x24] sm:$0xf0]  ;;  %v2145_v39 = vor.u32 %v1587_v27, %v1524_v34  ;;  %v1585_v40 = vld [vmem:[%s2368_s5 + $0x24] sm:$0xf]  ;;  %v1516_v41 = vld [vmem:[%s2368_s5 + $0x28] sm:$0xf0] }
 0x973   :  { %1635 = vtanh.f32 %v609_v46  ;;  %v2154_v46 = vor.u32 %v1586_v38, %v1514_v37  ;;  %925 = vmatpush.bf16.msra.mxu3 %v2145_v39  ;;  %1133 = vmatpush.bf16.msra.mxu1 %v2145_v39 }
 0x974   :  { %1637 = vtanh.f32 %v610_v59  ;;  %v2158_v59 = vor.u32 %v1585_v40, %v1516_v41 }
 0x977   :  { %926 = vmatpush.bf16.msra.mxu3 %v2158_v59  ;;  %1134 = vmatpush.bf16.msra.mxu1 %v2158_v59 }
 0x978   :  { %v594_v47 = vpop.f32.mrf.mxu0  ;;  %v607_v48 = vpop.f32.mrf.mxu1 }
 0x979   :  { %v1636_v49 = vpop.eup %1635  ;;  %v1506_v47 = vld [vmem:[%s2368_s5 + $0x10] sm:$0xf]  ;;  %v1584_v48 = vld [vmem:[%s2368_s5 + $0x14] sm:$0xf0] }
 0x97a   :  { %v613_v50 = vmul.f32 0.5, %v1636_v49  ;;  %v1638_v52 = vpop.eup %1637  ;;  %v1583_v49 = vld [vmem:[%s2368_s5 + $0x14] sm:$0xf] }
 0x97b   :  { %v615_v32 = vmul.f32 0.5, %v1638_v52 }
 0x97c   :  { %v614_v51 = vadd.f32 0.5, %v613_v50  ;;  %v1508_v50 = vld [vmem:[%s2368_s5 + $0x18] sm:$0xf0] }
 0x97d   :  { %v616_v14 = vadd.f32 0.5, %v615_v32 }
 0x97e   :  { %v618_v53 = vmul.f32 %v1638_v52, %v614_v51  ;;  %v617_v10 = vmul.f32 %v614_v51, %v2047_v19  ;;  %v1522_v19 = vld [vmem:[%s2368_s5 + $0x30] sm:$0xf]  ;;  %v2174_v51 = vor.u32 %v1584_v48, %v1506_v47  ;;  %v2178_v52 = vor.u32 %v1583_v49, %v1508_v50 }
 0x97f   :  { %v2134_v29 = vor.u32 %v1588_v23, %v1522_v19 }
 0x980   :  { %620 = vrot.lane.b32.xlu0 %v618_v53, %s1748_s17  ;;  %927 = vmatpush.bf16.msra.mxu3 %v2178_v52  ;;  %v1498_v53 = vld [vmem:[%s2368_s5] sm:$0xf] }
 0x981   :  { %912 = vmatpush.bf16.msra.mxu2 %v2134_v29  ;;  %1135 = vmatpush.bf16.msra.mxu1 %v2178_v52  ;;  %v2194_v54 = vor.u32 %v1582_v42, %v1498_v53 }
 0x984   :  { %928 = vmatpush.bf16.msra.mxu3 %v2199_v56 }
 0x985   :  { %913 = vmatpush.bf16.msra.mxu2 %v2154_v46  ;;  %1136 = vmatpush.bf16.msra.mxu1 %v2199_v56 }
 0x988   :  { %338 = vrot.lane.b32.xlu0 %v1971_v30, %s1748_s17  ;;  %v1474_v30 = vld [vmem:[%s2367_s4 + $0x20] sm:$0xf] }
 0x989   :  { %v1475_v61 = vor.u32 %v1578_v58, %v1474_v30  ;;  %914 = vmatpush.bf16.msra.mxu2 %v2174_v51  ;;  %v133_v30 = vadd.f32 %v2031_v44, %v1939_v35 }
 0x98b   :  { %789 = vmatpush.bf16.msrb.mxu0 %v1475_v61 }
 0x98d   :  { %915 = vmatpush.bf16.msra.mxu2 %v2194_v54 }
 0x98f   :  { %790 = vmatpush.bf16.msrb.mxu0 %v1467_v6 }
 0x993   :  { %791 = vmatpush.bf16.msrb.mxu0 %v1459_v9 }
 0x997   :  { %1120 = vmatpush.bf16.msra.mxu0 %v2134_v29 }
 0x99b   :  { %1121 = vmatpush.bf16.msra.mxu0 %v2154_v46 }
 0x99f   :  { %1122 = vmatpush.bf16.msra.mxu0 %v2174_v51 }
 0x9a3   :  { %1123 = vmatpush.bf16.msra.mxu0 %v2194_v54 }
 0x9f2   :  { %v621_v31 = vpop.permute.xlu0 %620 }
 0x9f3   :  { %v2115_v12 = vadd.f32 %v621_v31, %v617_v10 }
 0x9f5   :  { %1639 = vtanh.f32 %v2115_v12 }
 0x9fa   :  { %v339_v13 = vpop.permute.xlu0 %338 }
 0x9fb   :  { %v1640_v16 = vpop.eup %1639  ;;  %341 = vst.msk [vmem:[#allocation3 + $0x4] sm:$0xf] %vm282_vm2, %v339_v13 }
 0x9fc   :  { %v625_v17 = vmul.f32 %v1640_v16, %v616_v14 }
 0x9fe   :  { %v2119_v18 = vpack.c.bf16 %v625_v17, %v625_v17 }
 0xa00   :  { %v634_v20 = vunpack.c.l.b16 %v2119_v18 }
 0xa02   :  { %v635_v21 = vpack.c.b16 %v634_v20, %v634_v20  ;;  %v1569_v22 = vld [vmem:[#allocation3] sm:$0xff] }
 0xa03   :  { %1488 = vmatmul.msk.bf16.vlgmr.msrb.gmra.mxu0 %vm230_vm1, %v1569_v22  ;;  %1492 = vmatmul.msk.bf16.vlgmr.msrb.gmra.mxu1 %vm230_vm1, %v1569_v22 }
 0xa04   :  { %636 = vrot.lane.b32.xlu1 %v635_v21, %s1748_s17  ;;  %1224 = vmatpush.bf16.msrb.mxu0 %v2134_v29 }
 0xa05   :  { %1237 = vmatpush.bf16.msrb.mxu1 %v2145_v39 }
 0xa08   :  { %1225 = vmatpush.bf16.msrb.mxu0 %v2154_v46 }
 0xa09   :  { %1238 = vmatpush.bf16.msrb.mxu1 %v2158_v59 }
 0xa0c   :  { %1226 = vmatpush.bf16.msrb.mxu0 %v2174_v51 }
 0xa0d   :  { %1239 = vmatpush.bf16.msrb.mxu1 %v2178_v52 }
 0xa10   :  { %1227 = vmatpush.bf16.msrb.mxu0 %v2194_v54 }
 0xa11   :  { %1240 = vmatpush.bf16.msrb.mxu1 %v2199_v56 }
 0xa76   :  { %v637_v57 = vpop.permute.xlu1 %636 }
 0xa77   :  { %1438 = vmatmul.msk.bf16.vlgmr.msrb.gmra.mxu2 %vm230_vm1, %v637_v57  ;;  %1439 = vmatmul.msk.bf16.vlgmr.msrb.gmra.mxu3 %vm230_vm1, %v637_v57 }
 0xa78   :  { %964 = vmatpush.bf16.msrb.mxu2 %v2134_v29  ;;  %977 = vmatpush.bf16.msrb.mxu3 %v2145_v39 }
 0xa7c   :  { %965 = vmatpush.bf16.msrb.mxu2 %v2154_v46  ;;  %978 = vmatpush.bf16.msrb.mxu3 %v2158_v59 }
 0xa80   :  { %966 = vmatpush.bf16.msrb.mxu2 %v2174_v51  ;;  %979 = vmatpush.bf16.msrb.mxu3 %v2178_v52  ;;  %v793_v35 = vpop.f32.mrf.mxu0  ;;  %v822_v45 = vpop.f32.mrf.mxu1 }
 0xa81   :  { %v794_v11 = vadd.f32 %v793_v35, %v2240_v3  ;;  %v823_v9 = vadd.f32 %v822_v45, %v2246_v36 }
 0xa84   :  { %967 = vmatpush.bf16.msrb.mxu2 %v2194_v54  ;;  %980 = vmatpush.bf16.msrb.mxu3 %v2199_v56 }
 0xa87   :  { %916 = vmatmul.bf16.vlgmr.msra.gmra.mxu2 %v1751_v33  ;;  %929 = vmatmul.bf16.vlgmr.msra.gmra.mxu3 %v1751_v33 }
 0xa88   :  { %1016 = vmatpush.bf16.msra.mxu2 %v2134_v29  ;;  %1029 = vmatpush.bf16.msra.mxu3 %v2145_v39  ;;  %v795_v47 = vpop.f32.mrf.mxu0  ;;  %v824_v48 = vpop.f32.mrf.mxu1 }
 0xa89   :  { %v796_v49 = vadd.f32 %v795_v47, %v2240_v3  ;;  %v825_v42 = vadd.f32 %v824_v48, %v2246_v36 }
 0xa8c   :  { %1017 = vmatpush.bf16.msra.mxu2 %v2154_v46  ;;  %1030 = vmatpush.bf16.msra.mxu3 %v2158_v59 }
 0xa90   :  { %1018 = vmatpush.bf16.msra.mxu2 %v2174_v51  ;;  %1031 = vmatpush.bf16.msra.mxu3 %v2178_v52 }
 0xa94   :  { %1019 = vmatpush.bf16.msra.mxu2 %v2194_v54  ;;  %1032 = vmatpush.bf16.msra.mxu3 %v2199_v56 }
 0xafa   :  { %v650_v33 = vpop.f32.mrf.mxu2  ;;  %v663_v58 = vpop.f32.mrf.mxu3 }
 0xafb   :  { %v667_v61 = vadd.f32 %v650_v33, %v133_v30  ;;  %v668_v63 = vadd.f32 %v663_v58, %v162_v60 }
 0xafd   :  { %1641 = vtanh.f32 %v667_v61 }
 0xafe   :  { %1643 = vtanh.f32 %v668_v63 }
 0xb02   :  { %v652_v1 = vpop.f32.mrf.mxu2  ;;  %v665_v2 = vpop.f32.mrf.mxu3 }
 0xb03   :  { %v1642_v4 = vpop.eup %1641 }
 0xb04   :  { %v671_v6 = vmul.f32 0.5, %v1642_v4  ;;  %v2244_v7 = vpop.eup %1643 }
 0xb06   :  { %v2242_v44 = vadd.f32 0.5, %v671_v6 }
 0xb08   :  { %v2250_v8 = vmul.f32 %v2244_v7, %v2242_v44 }
 0xb0a   :  { %v917_v15 = vpop.f32.mrf.mxu2  ;;  %v930_v25 = vpop.f32.mrf.mxu3 }
 0xb0b   :  { %v934_v26 = vadd.f32 %v917_v15, %v794_v11  ;;  %v935_v10 = vadd.f32 %v930_v25, %v823_v9  ;;  %v675_v25 = vmul.f32 %v2242_v44, %v2115_v12 }
 0xb0d   :  { %1645 = vtanh.f32 %v934_v26 }
 0xb0e   :  { %1647 = vtanh.f32 %v935_v10 }
 0xb12   :  { %v919_v31 = vpop.f32.mrf.mxu2  ;;  %v932_v32 = vpop.f32.mrf.mxu3 }
 0xb13   :  { %v1646_v13 = vpop.eup %1645 }
 0xb14   :  { %v938_v14 = vmul.f32 0.5, %v1646_v13  ;;  %v1648_v17 = vpop.eup %1647 }
 0xb15   :  { %v940_v23 = vmul.f32 0.5, %v1648_v17 }
 0xb16   :  { %v939_v16 = vadd.f32 0.5, %v938_v14 }
 0xb17   :  { %v941_v34 = vadd.f32 0.5, %v940_v23 }
 0xb18   :  { %v943_v20 = vmul.f32 %v1648_v17, %v939_v16  ;;  %v942_v21 = vmul.f32 0.0, %v939_v16 }
 0xb1a   :  { %945 = vrot.lane.b32.xlu1 %v943_v20, %s1748_s17 }
 0xb22   :  { %396 = vrot.lane.b32.xlu1 %v1988_v62, %s1748_s17 }
 0xb8c   :  { %v946_v22 = vpop.permute.xlu1 %945 }
 0xb8d   :  { %v948_v19 = vadd.f32 %v946_v22, %v942_v21 }
 0xb8f   :  { %1649 = vtanh.f32 %v948_v19 }
 0xb94   :  { %v397_v27 = vpop.permute.xlu1 %396 }
 0xb95   :  { %v1650_v37 = vpop.eup %1649  ;;  %399 = vst.msk [vmem:[#allocation3 + $0x8] sm:$0xf] %vm282_vm2, %v397_v27 }
 0xb96   :  { %v950_v38 = vmul.f32 %v1650_v37, %v941_v34 }
 0xb98   :  { %v953_v40 = vpack.c.bf16 %v950_v38, %v950_v38 }
 0xb9a   :  { %955 = vrot.lane.b32.xlu2 %v953_v40, %s1748_s17 }
 0xba2   :  { %454 = vrot.lane.b32.xlu2 %v2021_v28, %s1748_s17 }
 0xbf4   :  { %v956_v41 = vpop.permute.xlu2 %955 }
 0xbf5   :  { %1528 = vmatmul.msk.bf16.vlgmr.msrb.gmra.mxu2 %vm230_vm1, %v956_v41  ;;  %1529 = vmatmul.msk.bf16.vlgmr.msrb.gmra.mxu3 %vm230_vm1, %v956_v41 }
 0xbf6   :  { %1068 = vmatpush.bf16.msrb.mxu2 %v2134_v29  ;;  %1081 = vmatpush.bf16.msrb.mxu3 %v2145_v39 }
 0xbfa   :  { %1069 = vmatpush.bf16.msrb.mxu2 %v2154_v46  ;;  %1082 = vmatpush.bf16.msrb.mxu3 %v2158_v59 }
 0xbfc   :  { %v455_v62 = vpop.permute.xlu2 %454 }
 0xbfd   :  { %457 = vst.msk [vmem:[#allocation3 + $0xc] sm:$0xf] %vm282_vm2, %v455_v62 }
 0xbfe   :  { %1070 = vmatpush.bf16.msrb.mxu2 %v2174_v51  ;;  %1083 = vmatpush.bf16.msrb.mxu3 %v2178_v52 }
 0xc02   :  { %1071 = vmatpush.bf16.msrb.mxu2 %v2194_v54  ;;  %1084 = vmatpush.bf16.msrb.mxu3 %v2199_v56 }
 0xc04   :  { %v1570_v28 = vld [vmem:[#allocation3 + $0x8] sm:$0xff] }
 0xc05   :  { %1489 = vmatmul.msk.bf16.gmra.mxu0 %vm230_vm1, %v1570_v28  ;;  %1493 = vmatmul.msk.bf16.gmra.mxu1 %vm230_vm1, %v1570_v28 }
 0xc78   :  { %v969_v50 = vpop.f32.mrf.mxu2  ;;  %v982_v53 = vpop.f32.mrf.mxu3 }
 0xc79   :  { %v986_v43 = vadd.f32 %v969_v50, %v796_v49  ;;  %v987_v55 = vadd.f32 %v982_v53, %v825_v42 }
 0xc7b   :  { %1651 = vtanh.f32 %v986_v43 }
 0xc7c   :  { %1653 = vtanh.f32 %v987_v55 }
 0xc80   :  { %v971_v57 = vpop.f32.mrf.mxu2  ;;  %v984_v30 = vpop.f32.mrf.mxu3 }
 0xc81   :  { %v1652_v33 = vpop.eup %1651 }
 0xc82   :  { %v990_v58 = vmul.f32 0.5, %v1652_v33  ;;  %v1654_v61 = vpop.eup %1653  ;;  %v798_v12 = vpop.f32.mrf.mxu0 }
 0xc83   :  { %v992_v4 = vmul.f32 0.5, %v1654_v61  ;;  %v827_v44 = vpop.f32.mrf.mxu1  ;;  %v799_v13 = vadd.f32 %v798_v12, %v2240_v3 }
 0xc84   :  { %v991_v60 = vadd.f32 0.5, %v990_v58  ;;  %v828_v17 = vadd.f32 %v827_v44, %v2246_v36 }
 0xc85   :  { %v993_v6 = vadd.f32 0.5, %v992_v4 }
 0xc86   :  { %v995_v63 = vmul.f32 %v1654_v61, %v991_v60  ;;  %v994_v0 = vmul.f32 %v991_v60, %v948_v19 }
 0xc88   :  { %997 = vrot.lane.b32.xlu0 %v995_v63, %s1748_s17 }
 0xcfa   :  { %v998_v1 = vpop.permute.xlu0 %997 }
 0xcfb   :  { %v1000_v2 = vadd.f32 %v998_v1, %v994_v0 }
 0xcfd   :  { %1655 = vtanh.f32 %v1000_v2 }
 0xd03   :  { %v1656_v35 = vpop.eup %1655 }
 0xd04   :  { %v1002_v45 = vmul.f32 %v1656_v35, %v993_v6 }
 0xd06   :  { %v1005_v11 = vpack.c.bf16 %v1002_v45, %v1002_v45 }
 0xd08   :  { %1007 = vrot.lane.b32.xlu0 %v1005_v11, %s1748_s17 }
 0xd10   :  { %678 = vrot.lane.b32.xlu0 %v2250_v8, %s1748_s17 }
 0xd18   :  { %570 = vrot.lane.b32.xlu0 %v2050_v24, %s1748_s17  ;;  %v673_v24 = vmul.f32 0.5, %v2244_v7 }
 0xd1a   :  { %v674_v10 = vadd.f32 0.5, %v673_v24 }
 0xd7a   :  { %v1008_v15 = vpop.permute.xlu0 %1007 }
 0xd7b   :  { %1530 = vmatmul.msk.bf16.vlgmr.msra.gmra.mxu2 %vm230_vm1, %v1008_v15  ;;  %1531 = vmatmul.msk.bf16.vlgmr.msra.gmra.mxu3 %vm230_vm1, %v1008_v15 }
 0xd7c   :  { %1172 = vmatpush.bf16.msra.mxu2 %v2134_v29  ;;  %1185 = vmatpush.bf16.msra.mxu3 %v2145_v39 }
 0xd80   :  { %1173 = vmatpush.bf16.msra.mxu2 %v2154_v46  ;;  %1186 = vmatpush.bf16.msra.mxu3 %v2158_v59 }
 0xd82   :  { %v679_v8 = vpop.permute.xlu0 %678 }
 0xd83   :  { %v681_v9 = vadd.f32 %v679_v8, %v675_v25 }
 0xd84   :  { %1174 = vmatpush.bf16.msra.mxu2 %v2174_v51  ;;  %1187 = vmatpush.bf16.msra.mxu3 %v2178_v52 }
 0xd85   :  { %1657 = vtanh.f32 %v681_v9 }
 0xd88   :  { %1175 = vmatpush.bf16.msra.mxu2 %v2194_v54  ;;  %1188 = vmatpush.bf16.msra.mxu3 %v2199_v56 }
 0xd8a   :  { %v571_v26 = vpop.permute.xlu0 %570 }
 0xd8b   :  { %v1658_v31 = vpop.eup %1657  ;;  %573 = vst.msk [vmem:[#allocation3 + $0x14] sm:$0xf] %vm282_vm2, %v571_v26 }
 0xd8c   :  { %v683_v32 = vmul.f32 %v1658_v31, %v674_v10 }
 0xd8e   :  { %v684_v50 = vpack.c.bf16 %v683_v32, %v683_v32 }
 0xdfe   :  { %v1021_v14 = vpop.f32.mrf.mxu2  ;;  %v1034_v16 = vpop.f32.mrf.mxu3 }
 0xdff   :  { %v1038_v20 = vadd.f32 %v1021_v14, %v799_v13  ;;  %v1039_v7 = vadd.f32 %v1034_v16, %v828_v17 }
 0xe01   :  { %1659 = vtanh.f32 %v1038_v20 }
 0xe02   :  { %1661 = vtanh.f32 %v1039_v7 }
 0xe06   :  { %v1023_v21 = vpop.f32.mrf.mxu2  ;;  %v1036_v22 = vpop.f32.mrf.mxu3 }
 0xe07   :  { %v1660_v19 = vpop.eup %1659 }
 0xe08   :  { %v1042_v23 = vmul.f32 0.5, %v1660_v19  ;;  %v1662_v34 = vpop.eup %1661 }
 0xe09   :  { %v1044_v62 = vmul.f32 0.5, %v1662_v34 }
 0xe0a   :  { %v1043_v27 = vadd.f32 0.5, %v1042_v23 }
 0xe0b   :  { %v1045_v28 = vadd.f32 0.5, %v1044_v62 }
 0xe0c   :  { %v1047_v37 = vmul.f32 %v1662_v34, %v1043_v27  ;;  %v1046_v38 = vmul.f32 %v1043_v27, %v1000_v2 }
 0xe0e   :  { %1049 = vrot.lane.b32.xlu1 %v1047_v37, %s1748_s17 }
 0xe80   :  { %v1050_v40 = vpop.permute.xlu1 %1049 }
 0xe81   :  { %v1052_v41 = vadd.f32 %v1050_v40, %v1046_v38 }
 0xe83   :  { %1663 = vtanh.f32 %v1052_v41 }
 0xe89   :  { %v1664_v47 = vpop.eup %1663 }
 0xe8a   :  { %v1054_v48 = vmul.f32 %v1664_v47, %v1045_v28 }
 0xe8c   :  { %v1057_v49 = vpack.c.bf16 %v1054_v48, %v1054_v48 }
 0xe8e   :  { %1059 = vrot.lane.b32.xlu2 %v1057_v49, %s1748_s17 }
 0xe96   :  { %512 = vrot.lane.b32.xlu2 %v2038_v5, %s1748_s17 }
 0xe9e   :  { %686 = vrot.lane.b32.xlu2 %v684_v50, %s1748_s17 }
 0xee8   :  { %v1060_v53 = vpop.permute.xlu2 %1059 }
 0xee9   :  { %1532 = vmatmul.msk.bf16.vlgmr.msrb.gmra.mxu2 %vm230_vm1, %v1060_v53  ;;  %1533 = vmatmul.msk.bf16.vlgmr.msrb.gmra.mxu3 %vm230_vm1, %v1060_v53 }
 0xeea   :  { %1276 = vmatpush.bf16.msrb.mxu2 %v2134_v29  ;;  %1289 = vmatpush.bf16.msrb.mxu3 %v2145_v39  ;;  %v800_v29 = vpop.f32.mrf.mxu0  ;;  %v829_v39 = vpop.f32.mrf.mxu1 }
 0xeee   :  { %1277 = vmatpush.bf16.msrb.mxu2 %v2154_v46  ;;  %1290 = vmatpush.bf16.msrb.mxu3 %v2158_v59  ;;  %v801_v46 = vadd.f32 %v800_v29, %v2240_v3 }
 0xef0   :  { %v513_v42 = vpop.permute.xlu2 %512 }
 0xef1   :  { %515 = vst.msk [vmem:[#allocation3 + $0x10] sm:$0xf] %vm282_vm2, %v513_v42 }
 0xef2   :  { %1278 = vmatpush.bf16.msrb.mxu2 %v2174_v51  ;;  %1291 = vmatpush.bf16.msrb.mxu3 %v2178_v52  ;;  %v830_v52 = vadd.f32 %v829_v39, %v2246_v36 }
 0xef6   :  { %1279 = vmatpush.bf16.msrb.mxu2 %v2194_v54  ;;  %1292 = vmatpush.bf16.msrb.mxu3 %v2199_v56 }
 0xef8   :  { %v687_v5 = vpop.permute.xlu2 %686  ;;  %v1571_v43 = vld [vmem:[#allocation3 + $0x10] sm:$0xff] }
 0xef9   :  { %689 = vst.msk [vmem:[#allocation3 + $0x1c] sm:$0xf] %vm282_vm2, %v687_v5  ;;  %1490 = vmatmul.msk.bf16.gmra.mxu0 %vm230_vm1, %v1571_v43  ;;  %1494 = vmatmul.msk.bf16.gmra.mxu1 %vm230_vm1, %v1571_v43 }
 0xf6c   :  { %v1073_v59 = vpop.f32.mrf.mxu2  ;;  %v1086_v51 = vpop.f32.mrf.mxu3 }
 0xf6d   :  { %v1090_v55 = vadd.f32 %v1073_v59, %v801_v46  ;;  %v1091_v54 = vadd.f32 %v1086_v51, %v830_v52 }
 0xf6f   :  { %1665 = vtanh.f32 %v1090_v55 }
 0xf70   :  { %1667 = vtanh.f32 %v1091_v54 }
 0xf74   :  { %v1075_v56 = vpop.f32.mrf.mxu2  ;;  %v1088_v57 = vpop.f32.mrf.mxu3 }
 0xf75   :  { %v1666_v30 = vpop.eup %1665 }
 0xf76   :  { %v1094_v33 = vmul.f32 0.5, %v1666_v30  ;;  %v1668_v60 = vpop.eup %1667  ;;  %v803_v25 = vpop.f32.mrf.mxu0 }
 0xf77   :  { %v1096_v2 = vmul.f32 0.5, %v1668_v60  ;;  %v832_v8 = vpop.f32.mrf.mxu1  ;;  %v804_v12 = vadd.f32 %v803_v25, %v2240_v3 }
 0xf78   :  { %v1095_v58 = vadd.f32 0.5, %v1094_v33  ;;  %v833_v14 = vadd.f32 %v832_v8, %v2246_v36 }
 0xf79   :  { %v1097_v6 = vadd.f32 0.5, %v1096_v2 }
 0xf7a   :  { %v1099_v61 = vmul.f32 %v1668_v60, %v1095_v58  ;;  %v1098_v63 = vmul.f32 %v1095_v58, %v1052_v41 }
 0xf7c   :  { %1101 = vrot.lane.b32.xlu1 %v1099_v61, %s1748_s17 }
 0xf7e   :  { %v805_v9 = vpop.f32.mrf.mxu0 }
 0xf7f   :  { %v834_v24 = vpop.f32.mrf.mxu1  ;;  %v806_v49 = vadd.f32 %v805_v9, %v2240_v3 }
 0xf80   :  { %v835_v42 = vadd.f32 %v834_v24, %v2246_v36 }
 0xf84   :  { %628 = vrot.lane.b32.xlu1 %v2119_v18, %s1748_s17 }
 0xfee   :  { %v1102_v0 = vpop.permute.xlu1 %1101 }
 0xfef   :  { %v1104_v1 = vadd.f32 %v1102_v0, %v1098_v63 }
 0xff1   :  { %1669 = vtanh.f32 %v1104_v1 }
 0xff6   :  { %v629_v4 = vpop.permute.xlu1 %628 }
 0xff7   :  { %v1670_v35 = vpop.eup %1669  ;;  %631 = vst.msk [vmem:[#allocation3 + $0x18] sm:$0xf] %vm282_vm2, %v629_v4 }
 0xff8   :  { %v1106_v45 = vmul.f32 %v1670_v35, %v1097_v6 }
 0xffa   :  { %v1109_v11 = vpack.c.bf16 %v1106_v45, %v1106_v45 }
 0xffc   :  { %1111 = vrot.lane.b32.xlu0 %v1109_v11, %s1748_s17 }
 0xffe   :  { %v1572_v15 = vld [vmem:[#allocation3 + $0x18] sm:$0xff] }
 0xfff   :  { %1491 = vmatmul.msk.bf16.gmra.mxu0 %vm230_vm1, %v1572_v15  ;;  %1495 = vmatmul.msk.bf16.gmra.mxu1 %vm230_vm1, %v1572_v15 }
0x106e   :  { %v1112_v18 = vpop.permute.xlu0 %1111 }
0x106f   :  { %1534 = vmatmul.msk.bf16.vlgmr.msra.gmra.mxu0 %vm230_vm1, %v1112_v18  ;;  %1535 = vmatmul.msk.bf16.vlgmr.msra.gmra.mxu1 %vm230_vm1, %v1112_v18 }
0x107c   :  { %v808_v26 = vpop.f32.mrf.mxu0  ;;  %v2328_v10 = vpop.f32.mrf.mxu1 }
0x107d   :  { %v809_v0 = vadd.f32 %v808_v26, %v2240_v3  ;;  %v838_v4 = vadd.f32 %v2328_v10, %v2246_v36 }
0x1084   :  { %v2330_v31 = vpop.f32.mrf.mxu0  ;;  %v2332_v32 = vpop.f32.mrf.mxu1 }
0x10ec   :  { %v1125_v44 = vpop.f32.mrf.mxu0  ;;  %v1138_v13 = vpop.f32.mrf.mxu1 }
0x10ed   :  { %v1142_v16 = vadd.f32 %v1125_v44, %v804_v12  ;;  %v1143_v17 = vadd.f32 %v1138_v13, %v833_v14 }
0x10ef   :  { %1671 = vtanh.f32 %v1142_v16 }
0x10f0   :  { %1673 = vtanh.f32 %v1143_v17 }
0x10f4   :  { %v1127_v20 = vpop.f32.mrf.mxu0  ;;  %v1140_v7 = vpop.f32.mrf.mxu1 }
0x10f5   :  { %v1672_v21 = vpop.eup %1671  ;;  %v811_v20 = vadd.f32 %v2330_v31, %v2240_v3  ;;  %v1591_v3 = vld [vmem:[#allocation4 + $0x10] sm:$0xff]  ;;  %v1590_v31 = vld [vmem:[#allocation4 + $0x8] sm:$0xff] }
0x10f6   :  { %v1146_v22 = vmul.f32 0.5, %v1672_v21  ;;  %v1674_v23 = vpop.eup %1673 }
0x10f7   :  { %v1148_v40 = vmul.f32 0.5, %v1674_v23 }
0x10f8   :  { %v1147_v19 = vadd.f32 0.5, %v1146_v22  ;;  %v840_v22 = vadd.f32 %v2332_v32, %v2246_v36  ;;  %v1589_v36 = vld [vmem:[#allocation4] sm:$0xff] }
0x10f9   :  { %v1149_v41 = vadd.f32 0.5, %v1148_v40 }
0x10fa   :  { %v1151_v27 = vmul.f32 %v1674_v23, %v1147_v19  ;;  %v1150_v34 = vmul.f32 %v1147_v19, %v1104_v1 }
0x10fc   :  { %1153 = vrot.lane.b32.xlu1 %v1151_v27, %s1748_s17 }
0x116e   :  { %v1154_v37 = vpop.permute.xlu1 %1153 }
0x116f   :  { %v1156_v38 = vadd.f32 %v1154_v37, %v1150_v34 }
0x1171   :  { %1675 = vtanh.f32 %v1156_v38 }
0x1177   :  { %v1676_v62 = vpop.eup %1675 }
0x1178   :  { %v1158_v28 = vmul.f32 %v1676_v62, %v1149_v41 }
0x117a   :  { %v1161_v47 = vpack.c.bf16 %v1158_v28, %v1158_v28  ;;  %v1592_v28 = vld [vmem:[#allocation4 + $0x18] sm:$0xff] }
0x117b   :  { %1362 = vmatpush.bf16.msra.mxu0 %v1592_v28 }
0x117c   :  { %1163 = vrot.lane.b32.xlu2 %v1161_v47, %s1748_s17 }
0x117f   :  { %1363 = vmatpush.bf16.msra.mxu0 %v1591_v3 }
0x1183   :  { %1364 = vmatpush.bf16.msra.mxu0 %v1590_v31 }
0x1187   :  { %1365 = vmatpush.bf16.msra.mxu0 %v1589_v36 }
0x11d6   :  { %v1164_v48 = vpop.permute.xlu2 %1163 }
0x11d7   :  { %1536 = vmatmul.msk.bf16.vlgmr.msra.gmra.mxu2 %vm230_vm1, %v1164_v48  ;;  %1537 = vmatmul.msk.bf16.vlgmr.msra.gmra.mxu3 %vm230_vm1, %v1164_v48 }
0x125a   :  { %v1177_v50 = vpop.f32.mrf.mxu2  ;;  %v1190_v53 = vpop.f32.mrf.mxu3 }
0x125b   :  { %v1194_v5 = vadd.f32 %v1177_v50, %v806_v49  ;;  %v1195_v43 = vadd.f32 %v1190_v53, %v835_v42 }
0x125d   :  { %1677 = vtanh.f32 %v1194_v5 }
0x125e   :  { %1679 = vtanh.f32 %v1195_v43 }
0x1262   :  { %v1179_v29 = vpop.f32.mrf.mxu2  ;;  %v1192_v39 = vpop.f32.mrf.mxu3 }
0x1263   :  { %v1678_v46 = vpop.eup %1677  ;;  %v1598_v29 = vld [vmem:[#allocation6] ss:$0 sm:$0xff] }
0x1264   :  { %v1198_v59 = vmul.f32 0.5, %v1678_v46  ;;  %v1680_v52 = vpop.eup %1679 }
0x1265   :  { %v1200_v30 = vmul.f32 0.5, %v1680_v52 }
0x1266   :  { %v1199_v51 = vadd.f32 0.5, %v1198_v59 }
0x1267   :  { %v1201_v33 = vadd.f32 0.5, %v1200_v30 }
0x1268   :  { %v1203_v55 = vmul.f32 %v1680_v52, %v1199_v51  ;;  %v1202_v54 = vmul.f32 %v1199_v51, %v1156_v38 }
0x126a   :  { %1205 = vrot.lane.b32.xlu0 %v1203_v55, %s1748_s17 }
0x12dc   :  { %v1206_v56 = vpop.permute.xlu0 %1205 }
0x12dd   :  { %v1208_v57 = vadd.f32 %v1206_v56, %v1202_v54 }
0x12df   :  { %1681 = vtanh.f32 %v1208_v57 }
0x12e5   :  { %v1682_v58 = vpop.eup %1681 }
0x12e6   :  { %v1210_v60 = vmul.f32 %v1682_v58, %v1201_v33 }
0x12e8   :  { %v1213_v61 = vpack.c.bf16 %v1210_v60, %v1210_v60 }
0x12ea   :  { %1215 = vrot.lane.b32.xlu1 %v1213_v61, %s1748_s17 }
0x135c   :  { %v1216_v63 = vpop.permute.xlu1 %1215 }
0x135d   :  { %1538 = vmatmul.msk.bf16.vlgmr.msrb.gmra.mxu0 %vm230_vm1, %v1216_v63  ;;  %1539 = vmatmul.msk.bf16.vlgmr.msrb.gmra.mxu1 %vm230_vm1, %v1216_v63 }
0x13da   :  { %v1229_v1 = vpop.f32.mrf.mxu0  ;;  %v1242_v2 = vpop.f32.mrf.mxu1 }
0x13db   :  { %v1246_v6 = vadd.f32 %v1229_v1, %v809_v0  ;;  %v1247_v35 = vadd.f32 %v1242_v2, %v838_v4 }
0x13dd   :  { %1683 = vtanh.f32 %v1246_v6 }
0x13de   :  { %1685 = vtanh.f32 %v1247_v35 }
0x13e2   :  { %v1231_v45 = vpop.f32.mrf.mxu0  ;;  %v1244_v11 = vpop.f32.mrf.mxu1 }
0x13e3   :  { %v1684_v15 = vpop.eup %1683 }
0x13e4   :  { %v1250_v18 = vmul.f32 0.5, %v1684_v15  ;;  %v1686_v8 = vpop.eup %1685 }
0x13e5   :  { %v1252_v44 = vmul.f32 0.5, %v1686_v8 }
0x13e6   :  { %v1251_v25 = vadd.f32 0.5, %v1250_v18 }
0x13e7   :  { %v1253_v13 = vadd.f32 0.5, %v1252_v44 }
0x13e8   :  { %v1255_v9 = vmul.f32 %v1686_v8, %v1251_v25  ;;  %v1254_v24 = vmul.f32 %v1251_v25, %v1208_v57 }
0x13ea   :  { %1257 = vrot.lane.b32.xlu2 %v1255_v9, %s1748_s17 }
0x1444   :  { %v1258_v26 = vpop.permute.xlu2 %1257 }
0x1445   :  { %v1260_v12 = vadd.f32 %v1258_v26, %v1254_v24 }
0x1447   :  { %1687 = vtanh.f32 %v1260_v12 }
0x144d   :  { %v1688_v10 = vpop.eup %1687 }
0x144e   :  { %v1262_v14 = vmul.f32 %v1688_v10, %v1253_v13 }
0x1450   :  { %v1265_v16 = vpack.c.bf16 %v1262_v14, %v1262_v14 }
0x1452   :  { %1267 = vrot.lane.b32.xlu0 %v1265_v16, %s1748_s17 }
0x14c4   :  { %v1268_v17 = vpop.permute.xlu0 %1267 }
0x14c5   :  { %1540 = vmatmul.msk.bf16.vlgmr.msrb.gmra.mxu2 %vm230_vm1, %v1268_v17  ;;  %1541 = vmatmul.msk.bf16.vlgmr.msrb.gmra.mxu3 %vm230_vm1, %v1268_v17 }
0x1548   :  { %v1281_v7 = vpop.f32.mrf.mxu2  ;;  %v1294_v21 = vpop.f32.mrf.mxu3 }
0x1549   :  { %v1298_v19 = vadd.f32 %v1281_v7, %v811_v20  ;;  %v1299_v23 = vadd.f32 %v1294_v21, %v840_v22 }
0x154b   :  { %1689 = vtanh.f32 %v1298_v19 }
0x154c   :  { %1691 = vtanh.f32 %v1299_v23 }
0x1550   :  { %v1283_v27 = vpop.f32.mrf.mxu2  ;;  %v1296_v34 = vpop.f32.mrf.mxu3 }
0x1551   :  { %v1690_v37 = vpop.eup %1689 }
0x1552   :  { %v1302_v38 = vmul.f32 0.5, %v1690_v37  ;;  %v1692_v41 = vpop.eup %1691 }
0x1553   :  { %v1304_v49 = vmul.f32 0.5, %v1692_v41 }
0x1554   :  { %v1303_v40 = vadd.f32 0.5, %v1302_v38 }
0x1555   :  { %v1305_v50 = vadd.f32 0.5, %v1304_v49 }
0x1556   :  { %v1307_v62 = vmul.f32 %v1692_v41, %v1303_v40  ;;  %v1306_v32 = vmul.f32 %v1303_v40, %v1260_v12 }
0x1558   :  { %1309 = vrot.lane.b32.xlu1 %v1307_v62, %s1748_s17 }
0x15ca   :  { %v1310_v47 = vpop.permute.xlu1 %1309 }
0x15cb   :  { %v1312_v48 = vadd.f32 %v1310_v47, %v1306_v32 }
0x15cd   :  { %1693 = vtanh.f32 %v1312_v48 }
0x15d3   :  { %v1694_v53 = vpop.eup %1693 }
0x15d4   :  { %v1314_v42 = vmul.f32 %v1694_v53, %v1305_v50 }
0x15d6   :  { %v1315_v5 = vpack.c.bf16 %v1314_v42, %v1314_v42 }
0x15d8   :  { %1329 = vrot.lane.b32.xlu2 %v1315_v5, %s1748_s17 }
0x1632   :  { %v1330_v43 = vpop.permute.xlu2 %1329 }
0x1633   :  { %1558 = vmatmul.msk.bf16.vlgmr.msra.gmra.mxu0 %vm230_vm1, %v1330_v43 }
0x16b0   :  { %v1367_v39 = vpop.f32.mrf.mxu0 }
0x16b1   :  { %v1368_v46 = vadd.f32 %v1598_v29, %v1367_v39 }
0x16b3   :  { %1371 = vst [vmem:[%s2372_s9] sm:$0xff] %v1368_v46 }
0x16b8   :  { %v1369_v59 = vpop.f32.mrf.mxu0 }
0x16b9   :  { %1376 = vsyncpa [#allocation5], 1 }
0x16ba   :  { %1377 = vsyncpa [#allocation7], 1 }

</bundles_post_ra>
